<compile_context>
chip_gen: v5e
topology: v5e:2x2
jax: 0.10.0
libtpu: 0.0.40
codegen_flags: <defaults>
</compile_context>

<pallas_src>
import functools

import jax
import jax.numpy as jnp
from jax.experimental import pallas as pl
from jax.experimental.pallas import tpu as pltpu

LN_EPS = 1e-5


def _layernorm(v, w, b):
    # f32 elementwise on all chips; only matmul *inputs* are cast to bf16.
    mu = jnp.mean(v, axis=-1, keepdims=True)
    c = v - mu
    var = jnp.mean(c * c, axis=-1, keepdims=True)
    return c * jax.lax.rsqrt(var + LN_EPS) * w + b


def _block_kernel(x_ref, ln1w_ref, ln1b_ref,
                  wq_ref, wk_ref, wv_ref, bq_ref, bk_ref, bv_ref,
                  wo_ref, bo_ref, ln2w_ref, ln2b_ref,
                  wfc_ref, bfc_ref, wproj_ref, bproj_ref,
                  o_ref, k_scr, v_scr, *, n_head, tq):
    qi = pl.program_id(1)
    _, L, D = x_ref.shape
    H = n_head
    hd = D // H
    scale = 1.0 / (hd ** 0.5)
    bf16 = jnp.bfloat16
    f32 = jnp.float32

    # ---- once per batch: K / V for the full sequence, stored head-major in VMEM ----
    @pl.when(qi == 0)
    def _():
        xf = x_ref[0].astype(f32)                                       # (L, D)
        h1f = _layernorm(xf, ln1w_ref[...], ln1b_ref[...]).astype(bf16)
        k = jnp.dot(h1f, wk_ref[...], preferred_element_type=f32) + bk_ref[...]
        v = jnp.dot(h1f, wv_ref[...], preferred_element_type=f32) + bv_ref[...]
        k_scr[...] = jnp.transpose(k.reshape(L, H, hd), (1, 0, 2)).astype(bf16)
        v_scr[...] = jnp.transpose(v.reshape(L, H, hd), (1, 0, 2)).astype(bf16)

    # ---- per query-row tile: attention + out_proj + MLP on TQ rows ----
    row0 = pl.multiple_of(qi * tq, tq)
    xt = x_ref[0, pl.ds(row0, tq), :].astype(f32)                       # (TQ, D)

    h1 = _layernorm(xt, ln1w_ref[...], ln1b_ref[...]).astype(bf16)
    q = jnp.dot(h1, wq_ref[...], preferred_element_type=f32) + bq_ref[...]
    q = q * scale
    qh = jnp.transpose(q.reshape(tq, H, hd), (1, 0, 2)).astype(bf16)    # (H, TQ, hd)

    # batched-head attention: MXU consumes K/V directly, no per-head slices / .T
    s = jnp.einsum('hqd,hkd->hqk', qh, k_scr[...],
                   preferred_element_type=f32)                          # (H, TQ, L)
    s = s - jnp.max(s, axis=-1, keepdims=True)
    p = jnp.exp(s)
    p = p * pl.reciprocal(jnp.sum(p, axis=-1, keepdims=True), approx=True)
    o = jnp.einsum('hqk,hkd->hqd', p.astype(bf16), v_scr[...],
                   preferred_element_type=f32)                          # (H, TQ, hd)
    attn = jnp.transpose(o, (1, 0, 2)).reshape(tq, D)                   # (TQ, D)

    attn = jnp.dot(attn.astype(bf16), wo_ref[...],
                   preferred_element_type=f32) + bo_ref[...]
    x1 = xt + attn

    # ---- MLP branch: x = x + c_proj(QuickGELU(c_fc(ln_2(x)))) ----
    h2 = _layernorm(x1, ln2w_ref[...], ln2b_ref[...]).astype(bf16)
    fc = jnp.dot(h2, wfc_ref[...], preferred_element_type=f32) + bfc_ref[...]
    g = fc * jax.nn.sigmoid(1.702 * fc)                                 # QuickGELU (f32)
    proj = jnp.dot(g.astype(bf16), wproj_ref[...],
                   preferred_element_type=f32) + bproj_ref[...]

    o_ref[0] = (x1 + proj).astype(o_ref.dtype)


def _pick_tq(L, tq=None):
    if tq is not None:
        assert L % tq == 0 and (tq == L or tq % 8 == 0), "bad query-tile size"
        return tq
    for cand in (256, 128, 64, 32, 16, 8):
        if L % cand == 0:
            return cand
    return L  # fall back: whole sequence (block == full dim is always legal)


def residual_attention_block_batch_first(x_nld, params, n_head, tq=None):
    """Core entry point. x_nld: (N, L, D) float32 — no layout transposes."""
    N, L, D = x_nld.shape
    H = n_head
    hd = D // H
    TQ = _pick_tq(L, tq)
    nQ = L // TQ
    bf16 = jnp.bfloat16

    # Cast weights to bf16 once, outside the grid; split the fused QKV projection
    # preserving the reference head/column order.  Biases and LN params stay f32.
    w_qkv, b_qkv = params["w_qkv"], params["b_qkv"]
    w_q = w_qkv[:, 0 * D:1 * D].astype(bf16)
    w_k = w_qkv[:, 1 * D:2 * D].astype(bf16)
    w_v = w_qkv[:, 2 * D:3 * D].astype(bf16)
    b_q = b_qkv[:, 0 * D:1 * D]
    b_k = b_qkv[:, 1 * D:2 * D]
    b_v = b_qkv[:, 2 * D:3 * D]
    w_o = params["w_o"].astype(bf16)
    w_fc = params["w_fc"].astype(bf16)
    w_proj = params["w_proj"].astype(bf16)

    def full(shape):
        return pl.BlockSpec(shape, lambda b, qi: (0,) * len(shape))

    in_specs = [
        pl.BlockSpec((1, L, D), lambda b, qi: (b, 0, 0)),   # x (whole batch row, constant over qi)
        full((1, D)), full((1, D)),                         # ln_1 w, b
        full((D, D)), full((D, D)), full((D, D)),           # w_q, w_k, w_v (bf16)
        full((1, D)), full((1, D)), full((1, D)),           # b_q, b_k, b_v
        full((D, D)), full((1, D)),                         # out_proj W, b
        full((1, D)), full((1, D)),                         # ln_2 w, b
        full((D, 4 * D)), full((1, 4 * D)),                 # c_fc W, b
        full((4 * D, D)), full((1, D)),                     # c_proj W, b
    ]

    # Advisory cost estimate (per-call totals).
    flops = int(N * (24 * L * D * D + 4 * L * L * D))
    transcendentals = int(N * (H * L * L + 4 * L * D + 2 * L))
    bytes_accessed = int(2 * N * L * D * 4 + 12 * D * D * 2 + 16 * D * 4)
    cost = pl.CostEstimate(flops=flops, transcendentals=transcendentals,
                           bytes_accessed=bytes_accessed)

    # VMEM budget: bf16 weights + x/out blocks + head-major K/V scratch + activations.
    hd_pad = max(hd, 128)
    need = (12 * D * D * 2 * 2
            + 2 * L * D * 4 * 2
            + 2 * TQ * D * 4
            + 2 * H * L * hd_pad * 2
            + (3 * TQ * 4 * D + 2 * H * TQ * L + 10 * TQ * D + 4 * L * D) * 4)
    vmem_limit = int(min(max(2 * need, 8 * 1024 * 1024), 64 * 1024 * 1024))

    out = pl.pallas_call(
        functools.partial(_block_kernel, n_head=n_head, tq=TQ),
        out_shape=jax.ShapeDtypeStruct((N, L, D), x_nld.dtype),
        grid=(N, nQ),
        in_specs=in_specs,
        out_specs=pl.BlockSpec((1, TQ, D), lambda b, qi: (b, qi, 0)),
        scratch_shapes=[pltpu.VMEM((H, L, hd), jnp.bfloat16),   # K (head-major)
                        pltpu.VMEM((H, L, hd), jnp.bfloat16)],  # V (head-major)
        compiler_params=pltpu.CompilerParams(
            dimension_semantics=("parallel", "arbitrary"),
            vmem_limit_bytes=vmem_limit),
        cost_estimate=cost,
    )(x_nld,
      params["ln1_w"], params["ln1_b"],
      w_q, w_k, w_v, b_q, b_k, b_v,
      w_o, params["b_o"],
      params["ln2_w"], params["ln2_b"],
      w_fc, params["b_fc"],
      w_proj, params["b_proj"])
    return out


def residual_attention_block(x, params, n_head, tq=None):
    """x: (L, N, D) float32 — PyTorch nn.MultiheadAttention default layout."""
    # Layout shim only (2 extra HBM round trips); prefer the batch-first entry
    # point when the surrounding model already keeps activations batch-first.
    xt = jnp.transpose(x, (1, 0, 2))
    out = residual_attention_block_batch_first(xt, params, n_head, tq=tq)
    return jnp.transpose(out, (1, 0, 2))


def reference_forward(x, p, n_head):
    """Pure-JAX f32 reference mirroring the PyTorch module semantics."""
    L, N, D = x.shape
    hd = D // n_head
    scale = 1.0 / (hd ** 0.5)

    def one_batch(xb):                                    # xb: (L, D)
        h1 = _layernorm(xb, p["ln1_w"], p["ln1_b"])
        qkv = h1 @ p["w_qkv"] + p["b_qkv"]
        q, k, v = qkv[:, :D], qkv[:, D:2 * D], qkv[:, 2 * D:]
        q = q.reshape(L, n_head, hd).transpose(1, 0, 2) * scale
        k = k.reshape(L, n_head, hd).transpose(1, 0, 2)
        v = v.reshape(L, n_head, hd).transpose(1, 0, 2)
        s = jnp.einsum("hqd,hkd->hqk", q, k)
        pattn = jax.nn.softmax(s, axis=-1)
        o = jnp.einsum("hqk,hkd->hqd", pattn, v).transpose(1, 0, 2).reshape(L, D)
        xb = xb + (o @ p["w_o"] + p["b_o"])
        h2 = _layernorm(xb, p["ln2_w"], p["ln2_b"])
        fc = h2 @ p["w_fc"] + p["b_fc"]
        g = fc * jax.nn.sigmoid(1.702 * fc)
        return xb + (g @ p["w_proj"] + p["b_proj"])

    return jax.vmap(one_batch, in_axes=1, out_axes=1)(x)


def init_params(key, d_model):
    D = d_model
    ks = jax.random.split(key, 6)
    scale = 0.02
    return {
        "ln1_w": jnp.ones((1, D), jnp.float32),
        "ln1_b": jnp.zeros((1, D), jnp.float32),
        # torch in_proj_weight is (3D, D); stored transposed here for x @ W.
        "w_qkv": scale * jax.random.normal(ks[0], (D, 3 * D), jnp.float32),
        "b_qkv": scale * jax.random.normal(ks[1], (1, 3 * D), jnp.float32),
        "w_o": scale * jax.random.normal(ks[2], (D, D), jnp.float32),
        "b_o": jnp.zeros((1, D), jnp.float32),
        "ln2_w": jnp.ones((1, D), jnp.float32),
        "ln2_b": jnp.zeros((1, D), jnp.float32),
        "w_fc": scale * jax.random.normal(ks[3], (D, 4 * D), jnp.float32),
        "b_fc": scale * jax.random.normal(ks[4], (1, 4 * D), jnp.float32),
        "w_proj": scale * jax.random.normal(ks[5], (4 * D, D), jnp.float32),
        "b_proj": jnp.zeros((1, D), jnp.float32),
    }


if __name__ == "__main__":
    key = jax.random.PRNGKey(0)
    kx1, kx2, kp = jax.random.split(key, 3)

    # bf16 matmul inputs (f32 accumulation) ⇒ loosened tolerance vs f32 reference.
    ATOL = RTOL = 2e-2

    # Test 1: single query tile (TQ == L).
    L, N, D, H = 8, 2, 32, 4
    x = jax.random.normal(kx1, (L, N, D), jnp.float32)
    params = init_params(kp, D)
    out = jax.block_until_ready(residual_attention_block(x, params, H))
    ref = reference_forward(x, params, H)
    assert out.shape == (L, N, D)
    err = float(jnp.max(jnp.abs(out - ref)))
    assert jnp.allclose(out, ref, atol=ATOL, rtol=RTOL), f"mismatch (test1), max|d|={err}"

    # Test 2: multi-tile query axis (L=16, TQ=8 ⇒ 2 tiles/batch) exercising the
    # per-batch K/V scratch + pl.when init path.
    L2 = 16
    x2 = jax.random.normal(kx2, (L2, N, D), jnp.float32)
    out2 = jax.block_until_ready(residual_attention_block(x2, params, H, tq=8))
    ref2 = reference_forward(x2, params, H)
    err2 = float(jnp.max(jnp.abs(out2 - ref2)))
    assert jnp.allclose(out2, ref2, atol=ATOL, rtol=RTOL), f"mismatch (test2), max|d|={err2}"

    print("KERNEL_OK")
</pallas_src>

<mosaic_0001>
module attributes {stable_mosaic.version = 11 : i64} {
  func.func @_block_kernel(%arg0: i32, %arg1: i32, %arg2: memref<1x8x32xf32, #tpu.memory_space<vmem>>, %arg3: memref<1x32xf32, #tpu.memory_space<vmem>>, %arg4: memref<1x32xf32, #tpu.memory_space<vmem>>, %arg5: memref<32x32xbf16, #tpu.memory_space<vmem>>, %arg6: memref<32x32xbf16, #tpu.memory_space<vmem>>, %arg7: memref<32x32xbf16, #tpu.memory_space<vmem>>, %arg8: memref<1x32xf32, #tpu.memory_space<vmem>>, %arg9: memref<1x32xf32, #tpu.memory_space<vmem>>, %arg10: memref<1x32xf32, #tpu.memory_space<vmem>>, %arg11: memref<32x32xbf16, #tpu.memory_space<vmem>>, %arg12: memref<1x32xf32, #tpu.memory_space<vmem>>, %arg13: memref<1x32xf32, #tpu.memory_space<vmem>>, %arg14: memref<1x32xf32, #tpu.memory_space<vmem>>, %arg15: memref<32x128xbf16, #tpu.memory_space<vmem>>, %arg16: memref<1x128xf32, #tpu.memory_space<vmem>>, %arg17: memref<128x32xbf16, #tpu.memory_space<vmem>>, %arg18: memref<1x32xf32, #tpu.memory_space<vmem>>, %arg19: memref<1x8x32xf32, #tpu.memory_space<vmem>>, %arg20: memref<4x8x8xbf16, #tpu.memory_space<vmem>>, %arg21: memref<4x8x8xbf16, #tpu.memory_space<vmem>>) attributes {dimension_semantics = [#tpu.dimension_semantics<parallel>, #tpu.dimension_semantics<arbitrary>], iteration_bounds = array<i64: 2, 1>, scalar_prefetch = 0 : i64, scratch_operands = 2 : i64, tpu.core_type = #tpu.core_type<tc>, window_params = [{transform_indices = @transform_0, window_bounds = array<i64: 1, 8, 32>}, {pipeline_mode = #tpu.pipeline_mode<synchronous>, transform_indices = @transform_1, window_bounds = array<i64: 1, 32>}, {pipeline_mode = #tpu.pipeline_mode<synchronous>, transform_indices = @transform_2, window_bounds = array<i64: 1, 32>}, {pipeline_mode = #tpu.pipeline_mode<synchronous>, transform_indices = @transform_3, window_bounds = array<i64: 32, 32>}, {pipeline_mode = #tpu.pipeline_mode<synchronous>, transform_indices = @transform_4, window_bounds = array<i64: 32, 32>}, {pipeline_mode = #tpu.pipeline_mode<synchronous>, transform_indices = @transform_5, window_bounds = array<i64: 32, 32>}, {pipeline_mode = #tpu.pipeline_mode<synchronous>, transform_indices = @transform_6, window_bounds = array<i64: 1, 32>}, {pipeline_mode = #tpu.pipeline_mode<synchronous>, transform_indices = @transform_7, window_bounds = array<i64: 1, 32>}, {pipeline_mode = #tpu.pipeline_mode<synchronous>, transform_indices = @transform_8, window_bounds = array<i64: 1, 32>}, {pipeline_mode = #tpu.pipeline_mode<synchronous>, transform_indices = @transform_9, window_bounds = array<i64: 32, 32>}, {pipeline_mode = #tpu.pipeline_mode<synchronous>, transform_indices = @transform_10, window_bounds = array<i64: 1, 32>}, {pipeline_mode = #tpu.pipeline_mode<synchronous>, transform_indices = @transform_11, window_bounds = array<i64: 1, 32>}, {pipeline_mode = #tpu.pipeline_mode<synchronous>, transform_indices = @transform_12, window_bounds = array<i64: 1, 32>}, {pipeline_mode = #tpu.pipeline_mode<synchronous>, transform_indices = @transform_13, window_bounds = array<i64: 32, 128>}, {pipeline_mode = #tpu.pipeline_mode<synchronous>, transform_indices = @transform_14, window_bounds = array<i64: 1, 128>}, {pipeline_mode = #tpu.pipeline_mode<synchronous>, transform_indices = @transform_15, window_bounds = array<i64: 128, 32>}, {pipeline_mode = #tpu.pipeline_mode<synchronous>, transform_indices = @transform_16, window_bounds = array<i64: 1, 32>}, {transform_indices = @transform_17, window_bounds = array<i64: 1, 8, 32>}]} {
    %c0_i32 = arith.constant 0 : i32
    %0 = arith.cmpi eq, %arg1, %c0_i32 : i32
    %1 = arith.extui %0 : i1 to i32
    %c0_i32_0 = arith.constant 0 : i32
    %2 = arith.cmpi ne, %1, %c0_i32_0 : i32
    scf.if %2 {
      %c0_55 = arith.constant 0 : index
      %c0_56 = arith.constant 0 : index
      %c0_57 = arith.constant 0 : index
      %111 = vector.load %arg2[%c0_55, %c0_56, %c0_57] : memref<1x8x32xf32, #tpu.memory_space<vmem>>, vector<1x8x32xf32>
      %112 = vector.shape_cast %111 : vector<1x8x32xf32> to vector<8x32xf32>
      %c0_58 = arith.constant 0 : index
      %c0_59 = arith.constant 0 : index
      %113 = vector.load %arg3[%c0_58, %c0_59] : memref<1x32xf32, #tpu.memory_space<vmem>>, vector<1x32xf32>
      %c0_60 = arith.constant 0 : index
      %c0_61 = arith.constant 0 : index
      %114 = vector.load %arg4[%c0_60, %c0_61] : memref<1x32xf32, #tpu.memory_space<vmem>>, vector<1x32xf32>
      %cst_62 = arith.constant dense<0.000000e+00> : vector<8xf32>
      %115 = vector.multi_reduction <add>, %112, %cst_62 [1] : vector<8x32xf32> to vector<8xf32>
      %116 = vector.shape_cast %115 : vector<8xf32> to vector<8x1xf32>
      %cst_63 = arith.constant 3.200000e+01 : f32
      %117 = vector.broadcast %cst_63 : f32 to vector<8x1xf32>
      %118 = arith.divf %116, %117 : vector<8x1xf32>
      %119 = vector.broadcast %118 : vector<8x1xf32> to vector<8x32xf32>
      %120 = arith.subf %112, %119 : vector<8x32xf32>
      %121 = arith.mulf %120, %120 : vector<8x32xf32>
      %cst_64 = arith.constant dense<0.000000e+00> : vector<8xf32>
      %122 = vector.multi_reduction <add>, %121, %cst_64 [1] : vector<8x32xf32> to vector<8xf32>
      %123 = vector.shape_cast %122 : vector<8xf32> to vector<8x1xf32>
      %cst_65 = arith.constant 3.200000e+01 : f32
      %124 = vector.broadcast %cst_65 : f32 to vector<8x1xf32>
      %125 = arith.divf %123, %124 : vector<8x1xf32>
      %cst_66 = arith.constant 9.99999974E-6 : f32
      %126 = vector.broadcast %cst_66 : f32 to vector<8x1xf32>
      %127 = arith.addf %125, %126 : vector<8x1xf32>
      %128 = math.rsqrt %127 : vector<8x1xf32>
      %129 = vector.broadcast %128 : vector<8x1xf32> to vector<8x32xf32>
      %130 = arith.mulf %120, %129 : vector<8x32xf32>
      %131 = vector.broadcast %113 : vector<1x32xf32> to vector<8x32xf32>
      %132 = arith.mulf %130, %131 : vector<8x32xf32>
      %133 = vector.broadcast %114 : vector<1x32xf32> to vector<8x32xf32>
      %134 = arith.addf %132, %133 : vector<8x32xf32>
      %135 = arith.truncf %134 : vector<8x32xf32> to vector<8x32xbf16>
      %c0_67 = arith.constant 0 : index
      %c0_68 = arith.constant 0 : index
      %136 = vector.load %arg6[%c0_67, %c0_68] : memref<32x32xbf16, #tpu.memory_space<vmem>>, vector<32x32xbf16>
      %cst_69 = arith.constant dense<0.000000e+00> : vector<8x32xf32>
      %137 = tpu.matmul %135, %136, %cst_69 {dimension_numbers = #tpu.dot_dimension_numbers<[1], [0], [0], [1], [0, 0, 1, 1], [], []>} : vector<8x32xbf16>, vector<32x32xbf16>, vector<8x32xf32> -> vector<8x32xf32>
      %c0_70 = arith.constant 0 : index
      %c0_71 = arith.constant 0 : index
      %138 = vector.load %arg9[%c0_70, %c0_71] : memref<1x32xf32, #tpu.memory_space<vmem>>, vector<1x32xf32>
      %139 = vector.broadcast %138 : vector<1x32xf32> to vector<8x32xf32>
      %140 = arith.addf %137, %139 : vector<8x32xf32>
      %c0_72 = arith.constant 0 : index
      %c0_73 = arith.constant 0 : index
      %141 = vector.load %arg7[%c0_72, %c0_73] : memref<32x32xbf16, #tpu.memory_space<vmem>>, vector<32x32xbf16>
      %cst_74 = arith.constant dense<0.000000e+00> : vector<8x32xf32>
      %142 = tpu.matmul %135, %141, %cst_74 {dimension_numbers = #tpu.dot_dimension_numbers<[1], [0], [0], [1], [0, 0, 1, 1], [], []>} : vector<8x32xbf16>, vector<32x32xbf16>, vector<8x32xf32> -> vector<8x32xf32>
      %c0_75 = arith.constant 0 : index
      %c0_76 = arith.constant 0 : index
      %143 = vector.load %arg10[%c0_75, %c0_76] : memref<1x32xf32, #tpu.memory_space<vmem>>, vector<1x32xf32>
      %144 = vector.broadcast %143 : vector<1x32xf32> to vector<8x32xf32>
      %145 = arith.addf %142, %144 : vector<8x32xf32>
      %146 = vector.shape_cast %140 : vector<8x32xf32> to vector<8x4x8xf32>
      %147 = tpu.transpose %146, [1, 0, 2] : vector<8x4x8xf32> -> vector<4x8x8xf32>
      %148 = arith.truncf %147 : vector<4x8x8xf32> to vector<4x8x8xbf16>
      %c0_77 = arith.constant 0 : index
      %c0_78 = arith.constant 0 : index
      %c0_79 = arith.constant 0 : index
      %149 = vector.load %arg20[%c0_77, %c0_78, %c0_79] : memref<4x8x8xbf16, #tpu.memory_space<vmem>>, vector<4x8x8xbf16>
      tpu.vector_store %arg20[%c0_77, %c0_78, %c0_79], %148 {strides = array<i32>} : memref<4x8x8xbf16, #tpu.memory_space<vmem>>, vector<4x8x8xbf16>,
      %150 = vector.shape_cast %145 : vector<8x32xf32> to vector<8x4x8xf32>
      %151 = tpu.transpose %150, [1, 0, 2] : vector<8x4x8xf32> -> vector<4x8x8xf32>
      %152 = arith.truncf %151 : vector<4x8x8xf32> to vector<4x8x8xbf16>
      %c0_80 = arith.constant 0 : index
      %c0_81 = arith.constant 0 : index
      %c0_82 = arith.constant 0 : index
      %153 = vector.load %arg21[%c0_80, %c0_81, %c0_82] : memref<4x8x8xbf16, #tpu.memory_space<vmem>>, vector<4x8x8xbf16>
      tpu.vector_store %arg21[%c0_80, %c0_81, %c0_82], %152 {strides = array<i32>} : memref<4x8x8xbf16, #tpu.memory_space<vmem>>, vector<4x8x8xbf16>,
    } else {
    }
    %c8_i32 = arith.constant 8 : i32
    %3 = arith.muli %arg1, %c8_i32 : i32
    %4 = tpu.assume_multiple %3, 8 : i32
    %c0 = arith.constant 0 : index
    %5 = arith.index_cast %4 : i32 to index
    %c0_1 = arith.constant 0 : index
    %6 = vector.load %arg2[%c0, %5, %c0_1] : memref<1x8x32xf32, #tpu.memory_space<vmem>>, vector<1x8x32xf32>
    %7 = vector.shape_cast %6 : vector<1x8x32xf32> to vector<8x32xf32>
    %c0_2 = arith.constant 0 : index
    %c0_3 = arith.constant 0 : index
    %8 = vector.load %arg3[%c0_2, %c0_3] : memref<1x32xf32, #tpu.memory_space<vmem>>, vector<1x32xf32>
    %c0_4 = arith.constant 0 : index
    %c0_5 = arith.constant 0 : index
    %9 = vector.load %arg4[%c0_4, %c0_5] : memref<1x32xf32, #tpu.memory_space<vmem>>, vector<1x32xf32>
    %cst = arith.constant dense<0.000000e+00> : vector<8xf32>
    %10 = vector.multi_reduction <add>, %7, %cst [1] : vector<8x32xf32> to vector<8xf32>
    %11 = vector.shape_cast %10 : vector<8xf32> to vector<8x1xf32>
    %cst_6 = arith.constant 3.200000e+01 : f32
    %12 = vector.broadcast %cst_6 : f32 to vector<8x1xf32>
    %13 = arith.divf %11, %12 : vector<8x1xf32>
    %14 = vector.broadcast %13 : vector<8x1xf32> to vector<8x32xf32>
    %15 = arith.subf %7, %14 : vector<8x32xf32>
    %16 = arith.mulf %15, %15 : vector<8x32xf32>
    %cst_7 = arith.constant dense<0.000000e+00> : vector<8xf32>
    %17 = vector.multi_reduction <add>, %16, %cst_7 [1] : vector<8x32xf32> to vector<8xf32>
    %18 = vector.shape_cast %17 : vector<8xf32> to vector<8x1xf32>
    %cst_8 = arith.constant 3.200000e+01 : f32
    %19 = vector.broadcast %cst_8 : f32 to vector<8x1xf32>
    %20 = arith.divf %18, %19 : vector<8x1xf32>
    %cst_9 = arith.constant 9.99999974E-6 : f32
    %21 = vector.broadcast %cst_9 : f32 to vector<8x1xf32>
    %22 = arith.addf %20, %21 : vector<8x1xf32>
    %23 = math.rsqrt %22 : vector<8x1xf32>
    %24 = vector.broadcast %23 : vector<8x1xf32> to vector<8x32xf32>
    %25 = arith.mulf %15, %24 : vector<8x32xf32>
    %26 = vector.broadcast %8 : vector<1x32xf32> to vector<8x32xf32>
    %27 = arith.mulf %25, %26 : vector<8x32xf32>
    %28 = vector.broadcast %9 : vector<1x32xf32> to vector<8x32xf32>
    %29 = arith.addf %27, %28 : vector<8x32xf32>
    %30 = arith.truncf %29 : vector<8x32xf32> to vector<8x32xbf16>
    %c0_10 = arith.constant 0 : index
    %c0_11 = arith.constant 0 : index
    %31 = vector.load %arg5[%c0_10, %c0_11] : memref<32x32xbf16, #tpu.memory_space<vmem>>, vector<32x32xbf16>
    %cst_12 = arith.constant dense<0.000000e+00> : vector<8x32xf32>
    %32 = tpu.matmul %30, %31, %cst_12 {dimension_numbers = #tpu.dot_dimension_numbers<[1], [0], [0], [1], [0, 0, 1, 1], [], []>} : vector<8x32xbf16>, vector<32x32xbf16>, vector<8x32xf32> -> vector<8x32xf32>
    %c0_13 = arith.constant 0 : index
    %c0_14 = arith.constant 0 : index
    %33 = vector.load %arg8[%c0_13, %c0_14] : memref<1x32xf32, #tpu.memory_space<vmem>>, vector<1x32xf32>
    %34 = vector.broadcast %33 : vector<1x32xf32> to vector<8x32xf32>
    %35 = arith.addf %32, %34 : vector<8x32xf32>
    %cst_15 = arith.constant 0.353553385 : f32
    %36 = vector.broadcast %cst_15 : f32 to vector<8x32xf32>
    %37 = arith.mulf %35, %36 : vector<8x32xf32>
    %38 = vector.shape_cast %37 : vector<8x32xf32> to vector<8x4x8xf32>
    %39 = tpu.transpose %38, [1, 0, 2] : vector<8x4x8xf32> -> vector<4x8x8xf32>
    %40 = arith.truncf %39 : vector<4x8x8xf32> to vector<4x8x8xbf16>
    %c0_16 = arith.constant 0 : index
    %c0_17 = arith.constant 0 : index
    %c0_18 = arith.constant 0 : index
    %41 = vector.load %arg20[%c0_16, %c0_17, %c0_18] : memref<4x8x8xbf16, #tpu.memory_space<vmem>>, vector<4x8x8xbf16>
    "tpu.trace_start"() <{level = 10 : i32, message = "hqd,hkd->hqk"}> : () -> ()
    %cst_19 = arith.constant dense<0.000000e+00> : vector<4x8x8xf32>
    %42 = tpu.matmul %40, %41, %cst_19 {dimension_numbers = #tpu.dot_dimension_numbers<[2], [2], [1], [1], [0, 0, 0, 1, 1, 1], [0], [0]>} : vector<4x8x8xbf16>, vector<4x8x8xbf16>, vector<4x8x8xf32> -> vector<4x8x8xf32>
    "tpu.trace_stop"() : () -> ()
    %cst_20 = arith.constant dense<0xFF800000> : vector<4x8xf32>
    %43 = vector.multi_reduction <maximumf>, %42, %cst_20 [2] : vector<4x8x8xf32> to vector<4x8xf32>
    %44 = vector.shape_cast %43 : vector<4x8xf32> to vector<4x8x1xf32>
    %45 = vector.broadcast %44 : vector<4x8x1xf32> to vector<4x8x8xf32>
    %46 = arith.subf %42, %45 : vector<4x8x8xf32>
    %47 = math.exp %46 : vector<4x8x8xf32>
    %cst_21 = arith.constant dense<0.000000e+00> : vector<4x8xf32>
    %48 = vector.multi_reduction <add>, %47, %cst_21 [2] : vector<4x8x8xf32> to vector<4x8xf32>
    %49 = vector.shape_cast %48 : vector<4x8xf32> to vector<4x8x1xf32>
    %50 = tpu.reciprocal %49 {approx = true} : vector<4x8x1xf32> -> vector<4x8x1xf32>
    %51 = vector.broadcast %50 : vector<4x8x1xf32> to vector<4x8x8xf32>
    %52 = arith.mulf %47, %51 : vector<4x8x8xf32>
    %53 = arith.truncf %52 : vector<4x8x8xf32> to vector<4x8x8xbf16>
    %c0_22 = arith.constant 0 : index
    %c0_23 = arith.constant 0 : index
    %c0_24 = arith.constant 0 : index
    %54 = vector.load %arg21[%c0_22, %c0_23, %c0_24] : memref<4x8x8xbf16, #tpu.memory_space<vmem>>, vector<4x8x8xbf16>
    "tpu.trace_start"() <{level = 10 : i32, message = "hqk,hkd->hqd"}> : () -> ()
    %cst_25 = arith.constant dense<0.000000e+00> : vector<4x8x8xf32>
    %55 = tpu.matmul %53, %54, %cst_25 {dimension_numbers = #tpu.dot_dimension_numbers<[2], [1], [1], [2], [0, 0, 0, 1, 1, 2], [0], [0]>} : vector<4x8x8xbf16>, vector<4x8x8xbf16>, vector<4x8x8xf32> -> vector<4x8x8xf32>
    "tpu.trace_stop"() : () -> ()
    %56 = tpu.transpose %55, [1, 0, 2] : vector<4x8x8xf32> -> vector<8x4x8xf32>
    %57 = vector.shape_cast %56 : vector<8x4x8xf32> to vector<8x32xf32>
    %58 = arith.truncf %57 : vector<8x32xf32> to vector<8x32xbf16>
    %c0_26 = arith.constant 0 : index
    %c0_27 = arith.constant 0 : index
    %59 = vector.load %arg11[%c0_26, %c0_27] : memref<32x32xbf16, #tpu.memory_space<vmem>>, vector<32x32xbf16>
    %cst_28 = arith.constant dense<0.000000e+00> : vector<8x32xf32>
    %60 = tpu.matmul %58, %59, %cst_28 {dimension_numbers = #tpu.dot_dimension_numbers<[1], [0], [0], [1], [0, 0, 1, 1], [], []>} : vector<8x32xbf16>, vector<32x32xbf16>, vector<8x32xf32> -> vector<8x32xf32>
    %c0_29 = arith.constant 0 : index
    %c0_30 = arith.constant 0 : index
    %61 = vector.load %arg12[%c0_29, %c0_30] : memref<1x32xf32, #tpu.memory_space<vmem>>, vector<1x32xf32>
    %62 = vector.broadcast %61 : vector<1x32xf32> to vector<8x32xf32>
    %63 = arith.addf %60, %62 : vector<8x32xf32>
    %64 = arith.addf %7, %63 : vector<8x32xf32>
    %c0_31 = arith.constant 0 : index
    %c0_32 = arith.constant 0 : index
    %65 = vector.load %arg13[%c0_31, %c0_32] : memref<1x32xf32, #tpu.memory_space<vmem>>, vector<1x32xf32>
    %c0_33 = arith.constant 0 : index
    %c0_34 = arith.constant 0 : index
    %66 = vector.load %arg14[%c0_33, %c0_34] : memref<1x32xf32, #tpu.memory_space<vmem>>, vector<1x32xf32>
    %cst_35 = arith.constant dense<0.000000e+00> : vector<8xf32>
    %67 = vector.multi_reduction <add>, %64, %cst_35 [1] : vector<8x32xf32> to vector<8xf32>
    %68 = vector.shape_cast %67 : vector<8xf32> to vector<8x1xf32>
    %cst_36 = arith.constant 3.200000e+01 : f32
    %69 = vector.broadcast %cst_36 : f32 to vector<8x1xf32>
    %70 = arith.divf %68, %69 : vector<8x1xf32>
    %71 = vector.broadcast %70 : vector<8x1xf32> to vector<8x32xf32>
    %72 = arith.subf %64, %71 : vector<8x32xf32>
    %73 = arith.mulf %72, %72 : vector<8x32xf32>
    %cst_37 = arith.constant dense<0.000000e+00> : vector<8xf32>
    %74 = vector.multi_reduction <add>, %73, %cst_37 [1] : vector<8x32xf32> to vector<8xf32>
    %75 = vector.shape_cast %74 : vector<8xf32> to vector<8x1xf32>
    %cst_38 = arith.constant 3.200000e+01 : f32
    %76 = vector.broadcast %cst_38 : f32 to vector<8x1xf32>
    %77 = arith.divf %75, %76 : vector<8x1xf32>
    %cst_39 = arith.constant 9.99999974E-6 : f32
    %78 = vector.broadcast %cst_39 : f32 to vector<8x1xf32>
    %79 = arith.addf %77, %78 : vector<8x1xf32>
    %80 = math.rsqrt %79 : vector<8x1xf32>
    %81 = vector.broadcast %80 : vector<8x1xf32> to vector<8x32xf32>
    %82 = arith.mulf %72, %81 : vector<8x32xf32>
    %83 = vector.broadcast %65 : vector<1x32xf32> to vector<8x32xf32>
    %84 = arith.mulf %82, %83 : vector<8x32xf32>
    %85 = vector.broadcast %66 : vector<1x32xf32> to vector<8x32xf32>
    %86 = arith.addf %84, %85 : vector<8x32xf32>
    %87 = arith.truncf %86 : vector<8x32xf32> to vector<8x32xbf16>
    %c0_40 = arith.constant 0 : index
    %c0_41 = arith.constant 0 : index
    %88 = vector.load %arg15[%c0_40, %c0_41] : memref<32x128xbf16, #tpu.memory_space<vmem>>, vector<32x128xbf16>
    %cst_42 = arith.constant dense<0.000000e+00> : vector<8x128xf32>
    %89 = tpu.matmul %87, %88, %cst_42 {dimension_numbers = #tpu.dot_dimension_numbers<[1], [0], [0], [1], [0, 0, 1, 1], [], []>} : vector<8x32xbf16>, vector<32x128xbf16>, vector<8x128xf32> -> vector<8x128xf32>
    %c0_43 = arith.constant 0 : index
    %c0_44 = arith.constant 0 : index
    %90 = vector.load %arg16[%c0_43, %c0_44] : memref<1x128xf32, #tpu.memory_space<vmem>>, vector<1x128xf32>
    %91 = vector.broadcast %90 : vector<1x128xf32> to vector<8x128xf32>
    %92 = arith.addf %89, %91 : vector<8x128xf32>
    %cst_45 = arith.constant 1.702000e+00 : f32
    %93 = vector.broadcast %cst_45 : f32 to vector<8x128xf32>
    %94 = arith.mulf %93, %92 : vector<8x128xf32>
    %95 = arith.negf %94 : vector<8x128xf32>
    %96 = math.exp %95 : vector<8x128xf32>
    %cst_46 = arith.constant 1.000000e+00 : f32
    %97 = vector.broadcast %cst_46 : f32 to vector<8x128xf32>
    %98 = arith.addf %97, %96 : vector<8x128xf32>
    %99 = arith.divf %97, %98 : vector<8x128xf32>
    %100 = arith.mulf %92, %99 : vector<8x128xf32>
    %101 = arith.truncf %100 : vector<8x128xf32> to vector<8x128xbf16>
    %c0_47 = arith.constant 0 : index
    %c0_48 = arith.constant 0 : index
    %102 = vector.load %arg17[%c0_47, %c0_48] : memref<128x32xbf16, #tpu.memory_space<vmem>>, vector<128x32xbf16>
    %cst_49 = arith.constant dense<0.000000e+00> : vector<8x32xf32>
    %103 = tpu.matmul %101, %102, %cst_49 {dimension_numbers = #tpu.dot_dimension_numbers<[1], [0], [0], [1], [0, 0, 1, 1], [], []>} : vector<8x128xbf16>, vector<128x32xbf16>, vector<8x32xf32> -> vector<8x32xf32>
    %c0_50 = arith.constant 0 : index
    %c0_51 = arith.constant 0 : index
    %104 = vector.load %arg18[%c0_50, %c0_51] : memref<1x32xf32, #tpu.memory_space<vmem>>, vector<1x32xf32>
    %105 = vector.broadcast %104 : vector<1x32xf32> to vector<8x32xf32>
    %106 = arith.addf %103, %105 : vector<8x32xf32>
    %107 = arith.addf %64, %106 : vector<8x32xf32>
    %c0_52 = arith.constant 0 : index
    %c0_53 = arith.constant 0 : index
    %c0_54 = arith.constant 0 : index
    %108 = vector.load %arg19[%c0_52, %c0_53, %c0_54] : memref<1x8x32xf32, #tpu.memory_space<vmem>>, vector<1x8x32xf32>
    %109 = vector.shape_cast %108 : vector<1x8x32xf32> to vector<8x32xf32>
    %110 = vector.shape_cast %107 : vector<8x32xf32> to vector<1x8x32xf32>
    tpu.vector_store %arg19[%c0_52, %c0_53, %c0_54], %110 {strides = array<i32>} : memref<1x8x32xf32, #tpu.memory_space<vmem>>, vector<1x8x32xf32>,
    return
  }
  func.func @transform_0(%arg0: i32, %arg1: i32) -> (i32, i32, i32) {
    %c0_i32 = arith.constant 0 : i32
    %c0_i32_0 = arith.constant 0 : i32
    %c0_i32_1 = arith.constant 0 : i32
    return %arg0, %c0_i32, %c0_i32_0 : i32, i32, i32
  }
  func.func @transform_1(%arg0: i32, %arg1: i32) -> (i32, i32) {
    %c0_i32 = arith.constant 0 : i32
    %c0_i32_0 = arith.constant 0 : i32
    %c0_i32_1 = arith.constant 0 : i32
    return %c0_i32, %c0_i32_0 : i32, i32
  }
  func.func @transform_2(%arg0: i32, %arg1: i32) -> (i32, i32) {
    %c0_i32 = arith.constant 0 : i32
    %c0_i32_0 = arith.constant 0 : i32
    %c0_i32_1 = arith.constant 0 : i32
    return %c0_i32, %c0_i32_0 : i32, i32
  }
  func.func @transform_3(%arg0: i32, %arg1: i32) -> (i32, i32) {
    %c0_i32 = arith.constant 0 : i32
    %c0_i32_0 = arith.constant 0 : i32
    %c0_i32_1 = arith.constant 0 : i32
    return %c0_i32, %c0_i32_0 : i32, i32
  }
  func.func @transform_4(%arg0: i32, %arg1: i32) -> (i32, i32) {
    %c0_i32 = arith.constant 0 : i32
    %c0_i32_0 = arith.constant 0 : i32
    %c0_i32_1 = arith.constant 0 : i32
    return %c0_i32, %c0_i32_0 : i32, i32
  }
  func.func @transform_5(%arg0: i32, %arg1: i32) -> (i32, i32) {
    %c0_i32 = arith.constant 0 : i32
    %c0_i32_0 = arith.constant 0 : i32
    %c0_i32_1 = arith.constant 0 : i32
    return %c0_i32, %c0_i32_0 : i32, i32
  }
  func.func @transform_6(%arg0: i32, %arg1: i32) -> (i32, i32) {
    %c0_i32 = arith.constant 0 : i32
    %c0_i32_0 = arith.constant 0 : i32
    %c0_i32_1 = arith.constant 0 : i32
    return %c0_i32, %c0_i32_0 : i32, i32
  }
  func.func @transform_7(%arg0: i32, %arg1: i32) -> (i32, i32) {
    %c0_i32 = arith.constant 0 : i32
    %c0_i32_0 = arith.constant 0 : i32
    %c0_i32_1 = arith.constant 0 : i32
    return %c0_i32, %c0_i32_0 : i32, i32
  }
  func.func @transform_8(%arg0: i32, %arg1: i32) -> (i32, i32) {
    %c0_i32 = arith.constant 0 : i32
    %c0_i32_0 = arith.constant 0 : i32
    %c0_i32_1 = arith.constant 0 : i32
    return %c0_i32, %c0_i32_0 : i32, i32
  }
  func.func @transform_9(%arg0: i32, %arg1: i32) -> (i32, i32) {
    %c0_i32 = arith.constant 0 : i32
    %c0_i32_0 = arith.constant 0 : i32
    %c0_i32_1 = arith.constant 0 : i32
    return %c0_i32, %c0_i32_0 : i32, i32
  }
  func.func @transform_10(%arg0: i32, %arg1: i32) -> (i32, i32) {
    %c0_i32 = arith.constant 0 : i32
    %c0_i32_0 = arith.constant 0 : i32
    %c0_i32_1 = arith.constant 0 : i32
    return %c0_i32, %c0_i32_0 : i32, i32
  }
  func.func @transform_11(%arg0: i32, %arg1: i32) -> (i32, i32) {
    %c0_i32 = arith.constant 0 : i32
    %c0_i32_0 = arith.constant 0 : i32
    %c0_i32_1 = arith.constant 0 : i32
    return %c0_i32, %c0_i32_0 : i32, i32
  }
  func.func @transform_12(%arg0: i32, %arg1: i32) -> (i32, i32) {
    %c0_i32 = arith.constant 0 : i32
    %c0_i32_0 = arith.constant 0 : i32
    %c0_i32_1 = arith.constant 0 : i32
    return %c0_i32, %c0_i32_0 : i32, i32
  }
  func.func @transform_13(%arg0: i32, %arg1: i32) -> (i32, i32) {
    %c0_i32 = arith.constant 0 : i32
    %c0_i32_0 = arith.constant 0 : i32
    %c0_i32_1 = arith.constant 0 : i32
    return %c0_i32, %c0_i32_0 : i32, i32
  }
  func.func @transform_14(%arg0: i32, %arg1: i32) -> (i32, i32) {
    %c0_i32 = arith.constant 0 : i32
    %c0_i32_0 = arith.constant 0 : i32
    %c0_i32_1 = arith.constant 0 : i32
    return %c0_i32, %c0_i32_0 : i32, i32
  }
  func.func @transform_15(%arg0: i32, %arg1: i32) -> (i32, i32) {
    %c0_i32 = arith.constant 0 : i32
    %c0_i32_0 = arith.constant 0 : i32
    %c0_i32_1 = arith.constant 0 : i32
    return %c0_i32, %c0_i32_0 : i32, i32
  }
  func.func @transform_16(%arg0: i32, %arg1: i32) -> (i32, i32) {
    %c0_i32 = arith.constant 0 : i32
    %c0_i32_0 = arith.constant 0 : i32
    %c0_i32_1 = arith.constant 0 : i32
    return %c0_i32, %c0_i32_0 : i32, i32
  }
  func.func @transform_17(%arg0: i32, %arg1: i32) -> (i32, i32, i32) {
    %c0_i32 = arith.constant 0 : i32
    %c0_i32_0 = arith.constant 0 : i32
    return %arg0, %arg1, %c0_i32 : i32, i32, i32
  }
}

</mosaic_0001>

<bundles_post_ra>
// kernel: tpu_custom_call.1
= control target key start
LH: loop header
LB: loop body
LE: loop exit
PB: predicated region body
PF: predicated region fallthrough
CT: control target
= control target key end

     0   :  { %s2785_s0 = inlined_call_operand.vmem [shape: f32[2,8,32], index: 0, kind: input, shape index: {}]   ;;  %s2786_s1 = inlined_call_operand.hbm [shape: f32[1,32], index: 1, kind: input, shape index: {}]   ;;  %s2787_s2 = inlined_call_operand.vmem [shape: f32[1,32], index: 2, kind: input, shape index: {}]   ;;  %s2788_s3 = inlined_call_operand.vmem [shape: bf16[32,32], index: 3, kind: input, shape index: {}]   ;;  %s2789_s4 = inlined_call_operand.vmem [shape: bf16[32,32], index: 4, kind: input, shape index: {}]   ;;  %s2790_s5 = inlined_call_operand.vmem [shape: bf16[32,32], index: 5, kind: input, shape index: {}]   ;;  %s2791_s6 = inlined_call_operand.vmem [shape: f32[1,32], index: 6, kind: input, shape index: {}]   ;;  %s2792_s7 = inlined_call_operand.vmem [shape: f32[1,32], index: 7, kind: input, shape index: {}]   ;;  %s2793_s8 = inlined_call_operand.vmem [shape: f32[1,32], index: 8, kind: input, shape index: {}]   ;;  %s2794_s9 = inlined_call_operand.vmem [shape: bf16[32,32], index: 9, kind: input, shape index: {}]   ;;  %s2795_s10 = inlined_call_operand.vmem [shape: f32[1,32], index: 10, kind: input, shape index: {}]   ;;  %s2796_s11 = inlined_call_operand.vmem [shape: f32[1,32], index: 11, kind: input, shape index: {}]   ;;  %s2797_s12 = inlined_call_operand.vmem [shape: f32[1,32], index: 12, kind: input, shape index: {}]   ;;  %s2798_s13 = inlined_call_operand.hbm [shape: bf16[32,128], index: 13, kind: input, shape index: {}]   ;;  %s2799_s14 = inlined_call_operand.vmem [shape: f32[1,128], index: 14, kind: input, shape index: {}]   ;;  %s2800_s15 = inlined_call_operand.vmem [shape: bf16[128,32], index: 15, kind: input, shape index: {}]   ;;  %s2801_s16 = inlined_call_operand.vmem [shape: f32[1,32], index: 16, kind: input, shape index: {}]   ;;  %s2802_s17 = inlined_call_operand.hbm [shape: f32[2,8,32], index: 17, kind: output, shape index: {}]  }
   0x1   :  { %2812 = sst [smem:[#allocation21_spill]] %s2785_s0 }
   0x2   :  { %2813 = sst [smem:[#allocation22_spill]] %s2786_s1 }
   0x3   :  { %2814 = sst [smem:[#allocation23_spill]] %s2787_s2 }
   0x4   :  { %22 = vsyncpa [#allocation5], 0 }
   0x5   :  { %23 = vsyncpa [#allocation8], 0 }
   0x6   :  { %24 = vsyncpa [#allocation6], 0 }
   0x7   :  { %26 = vsyncpa [#allocation6 + $0x1], 0  ;;  %s2326_s24 = smov 0   ;;  %s2328_s25 = smov 0  }
   0x8   :  { %s2330_s26 = smov 0   ;;  %s2332_s27 = smov 0  }
   0x9   :  { %s2334_s28 = smov 0   ;;  %s2336_s29 = smov 0  }
   0xa LB: > { %2815 = sst [smem:[#allocation13_spill]] %s2201_s24  ;;  %s1828_s0 = sadd.s32 4294967295, %s2221_s29   ;;  %s2221_s29 = sphi %s2336_s29, %s32_s29   ;;  %s2217_s28 = sphi %s2334_s28, %s2837_s28   ;;  %s2213_s27 = sphi %s2332_s27, %s2836_s27   ;;  %s2209_s26 = sphi %s2330_s26, %s2835_s26   ;;  %s2205_s25 = sphi %s2328_s25, %s2839_s25   ;;  %s2201_s24 = sphi %s2326_s24, %s2838_s24  }
   0xb   : > { %2816 = sst [smem:[#allocation14_spill]] %s2209_s26  ;;  %s1829_s30 = sadd.s32 4294967294, %s2221_s29  }
   0xc   : > { %2817 = sst [smem:[#allocation15_spill]] %s2217_s28  ;;  %s44_s18 = sadd.s32 1, %s2217_s28 }
   0xd   : > { %2818 = sst [smem:[#allocation16_spill]] %s2221_s29  ;;  %s415_s19 = sadd.s32 1, %s2209_s26 }
   0xe   : > { %p46_p0 = scmp.ge.s32.totalorder %s44_s18, 2  ;;  %p425_p1 = scmp.ne.s32.totalorder %s2209_s26, %s2205_s25 }
   0xf   : > { %p426_p2 = scmp.eq.s32.totalorder %s1828_s0, 1  ;;  %p431_p3 = scmp.ne.s32.totalorder %s2205_s25, %s2201_s24 }
  0x10   : > { %s2841_s18 = smov (%p46_p0, %s44_s18), 0  ;;  %p432_p5 = scmp.eq.s32.totalorder %s1829_s30, 1 }
  0x11   : > { %2819 = sst [smem:[#allocation17_spill]] %s2841_s18  ;;  %p2366_p4 = por %p426_p2, %p425_p1 }
  0x12   : > { %s410_s20 = ssub.s32 %s2217_s28, %s2841_s18  ;;  %p1830_p6 = scmp.ge.s32.totalorder %s2221_s29, 1 }
  0x13   : > { %s2820_s1 = scalar_select %p2366_p4, 1, 0 }
  0x14   : > { %p413_p7 = scmp.eq.s32.totalorder %s410_s20, 0  ;;  %p2373_p8 = por %p432_p5, %p431_p3 }
  0x15   : > { %2821 = sst [smem:[#allocation18_spill]] %s2820_s1  ;;  %p439_p9 = scmp.lt.s32.totalorder %s2221_s29, 3 }
  0x16   : > { %s2822_s21 = scalar_select %p2373_p8, 1, 0 }
  0x17   : > { %s2379_s22 = scalar_select %p413_p7, %s2209_s26, %s415_s19  }
  0x18   : > { %2823 = sst [smem:[#allocation19_spill]] %s2822_s21  ;;  %p2381_p10 = pnand %p1830_p6, %p439_p9 }
  0x19   : > { %2824 = sst [smem:[#allocation20_spill]] %s2379_s22  ;;  %p2385_p11 = scmp.eq.s32.totalorder %s1828_s0, 0 }
  0x1a   : > { %s2827_s28 = sld [smem:[#allocation22_spill]]  ;;  %p1957_p12 = pneg %p2381_p10 }
  0x1b   : > { %s2223_s21 = smov [#allocation4]   ;;  %s495_s29 = sshll.u32 %s2798_s13, 4  ;;  %s496_s29 = int_to_ptr.hbm [resolvable:$true] %s495_s29 }
  0x1c   : > { %s453_s19 = sshll.u32 %s2223_s21, 4  ;;  %p1958_p13 = pnand %p2385_p11, %p1957_p12  ;;  %s454_s19 = int_to_ptr.vmem [resolvable:$true] %s453_s19 }
  0x1d   : > { %s2224_s0 = smov [#allocation7]   ;;  %s2225_s18 = smov 64  }
  0x1e   : > { %s497_s1 = sshll.u32 %s2224_s0, 4  ;;  %s2226_s30 = smov 4   ;;  %s498_s1 = int_to_ptr.vmem [resolvable:$true] %s497_s1 }
  0x1f   : > { %1963 = dma.hbm_to_vmem [thread:$0]  (!%p1958_p13), %s496_s29, 256, %s498_s1, [#allocation8], %s2225_s18, %s2225_s18, %s2226_s30  }
  0x20   : > { %s451_s20 = sshll.u32 %s2827_s28, 4  ;;  %529 = sbr.rel (%p2381_p10) target bundleno = 1976 (0x7b8), region = 88  ;;  %s452_s20 = int_to_ptr.hbm [resolvable:$true] %s451_s20 }
  0x21   : > { %1960 = dma.hbm_to_vmem [thread:$0]  (!%p1958_p13), %s452_s20, 16, %s454_s19, [#allocation5]  }
  0x25   : > { %2188 = dma.done.wait (%p2385_p11), [#allocation5], 16  }
  0x26   : > { %2190 = vsyncadd (%p2385_p11), [#allocation5], 4294967280 }
  0x27   : > { %2192 = dma.done.wait (%p2385_p11), [#allocation8], 256  }
  0x28   : > { %2194 = vsyncadd (%p2385_p11), [#allocation8], 4294967040  ;;  %p586_p0 = scmp.lt.s32.totalorder %s2213_s27, 1  ;;  %s2828_s21 = sld [smem:[#allocation21_spill]]  ;;  %vm598_vm0 = vcmask 261120   ;;  %v2227_v2 = vmov 32.0  }
  0x29   : > { %2046 = vrcp.f32 %v2227_v2  ;;  %v1930_v19 = vld [vmem:[%s2789_s4 + $0x8] sm:$0xff]  ;;  %v1929_v21 = vld [vmem:[%s2789_s4] sm:$0xff]  ;;  %s2829_s2 = sld [smem:[#allocation23_spill]]  ;;  %s2228_s30 = smov 104   ;;  %vm717_vm8 = vcmask 1047556   ;;  %vm831_vm9 = vcmask 60416  }
  0x2a   : > { %s587_s26 = scalar_select %p586_p0, %s2213_s27, 1  ;;  %v1932_v20 = vld [vmem:[%s2790_s5 + $0x8] sm:$0xff]  ;;  %666 = vmatpush.bf16.msra.mxu0 %v1930_v19  ;;  %v1931_v22 = vld [vmem:[%s2790_s5] sm:$0xff]  ;;  %vm1174_vm10 = vcmask 64512   ;;  %vm1306_vm11 = vcmask 1043456   ;;  %vm1503_vm12 = vcmask 130048  }
  0x2b   : > { %699 = vmatpush.bf16.msra.mxu2 %v1932_v20  ;;  %v1934_v23 = vld [vmem:[%s2788_s3 + $0x8] sm:$0xff]  ;;  %v1933_v26 = vld [vmem:[%s2788_s3] sm:$0xff]  ;;  %s2233_s23 = smov 24   ;;  %s2234_s20 = smov 16   ;;  %vm1505_vm13 = vcmask 195584  }
  0x2c   : > { %s1838_s28 = sshll.u32 %s587_s26, 3  ;;  %v2034_v39 = vld [vmem:[#allocation4] ss:$0 sm:$0xff]  ;;  %s2229_s26 = smov 120  }
  0x2d   : > { %v2036_v52 = vld [vmem:[#allocation4] ss:$0 sm:$0xff]  ;;  %s2235_s19 = smov 8  }
  0x2e   : > { %s2414_s22 = scalar_lea.vmem %s2828_s21, %s1838_s28  ;;  %667 = vmatpush.bf16.msra.mxu0 %v1929_v21  ;;  %v2038_v57 = vld [vmem:[%s2792_s7] ss:$0 sm:$0xff]  ;;  %s2230_s28 = smov 112  }
  0x2f   : > { %v595_v0 = vld [vmem:[%s2414_s22] sm:$0xff]  ;;  %v2047_v3 = vpop.eup %2046  ;;  %700 = vmatpush.bf16.msra.mxu2 %v1931_v22 }
  0x30   : > { %v599_v1 = vsel %vm598_vm0, %v595_v0, 0.0  ;;  %v603_v4 = vmul.f32 32.0, %v2047_v3  ;;  %vm607_vm1 = vweird.f32 %v2047_v3  ;;  %v2035_v43 = vld [vmem:[%s2829_s2] ss:$0 sm:$0xff] }
  0x31   : > { %600 = vadd.xlane.f32.xlu0 %v599_v1  ;;  %v2037_v54 = vld [vmem:[%s2829_s2] ss:$0 sm:$0xff] }
  0x32   : > { %v604_v5 = vsub.f32 1.0, %v603_v4  ;;  %v2040_v63 = vld [vmem:[%s2791_s6] ss:$0 sm:$0xff] }
  0x33   : > { %1037 = vmatpush.bf16.msrb.mxu2 %v1934_v23 }
  0x34   : > { %v605_v6 = vmul.f32 %v2047_v3, %v604_v5 }
  0x36   : > { %v606_v7 = vadd.f32 %v2047_v3, %v605_v6  ;;  %v2231_v6 = vmov 1983009808  }
  0x37   : > { %1038 = vmatpush.bf16.msrb.mxu2 %v1933_v26 }
  0x38   : > { %v2418_v8 = vsel %vm607_vm1, %v2047_v3, %v606_v7  ;;  %v722_v7 = vunpack.c.l.s4 %v2231_v6 }
  0x39   : > { %971 = vadd.xlane.f32.xlu0 %v599_v1 }
  0xa4   : > { %v601_v9 = vpop.xlane.xlu0 %600 }
  0xa5   : > { %v609_v10 = vmul.f32 %v2418_v8, %v601_v9 }
  0xa7   : > { %v610_v11 = vsub.f32 %v595_v0, %v609_v10 }
  0xa9   : > { %v611_v12 = vmul.f32 %v610_v11, %v610_v11 }
  0xab   : > { %v612_v13 = vsel %vm598_vm0, %v611_v12, 0.0 }
  0xac   : > { %613 = vadd.xlane.f32.xlu1 %v612_v13  ;;  %v972_v14 = vpop.xlane.xlu0 %971 }
  0xad   : > { %v980_v15 = vmul.f32 %v972_v14, %v2418_v8 }
  0xaf   : > { %v981_v16 = vsub.f32 %v595_v0, %v980_v15 }
  0xb1   : > { %v982_v17 = vmul.f32 %v981_v16, %v981_v16 }
  0xb3   : > { %v983_v18 = vsel %vm598_vm0, %v982_v17, 0.0 }
  0xb4   : > { %984 = vadd.xlane.f32.xlu1 %v983_v18 }
 0x11f   : > { %v614_v24 = vpop.xlane.xlu1 %613 }
 0x120   : > { %v615_v25 = vmul.f32 %v614_v24, %v2418_v8 }
 0x122   : > { %v616_v27 = vadd.f32 1e-05, %v615_v25 }
 0x124   : > { %2048 = vrsqrt.f32 %v616_v27  ;;  %vm623_vm3 = vweird.f32 %v616_v27 }
 0x127   : > { %v985_v28 = vpop.xlane.xlu1 %984 }
 0x128   : > { %v986_v29 = vmul.f32 %v985_v28, %v2418_v8 }
 0x12a   : > { %v2049_v30 = vpop.eup %2048  ;;  %v987_v31 = vadd.f32 1e-05, %v986_v29 }
 0x12b   : > { %v618_v32 = vmul.f32 %v2049_v30, %v616_v27  ;;  %vm624_vm2 = vweird.f32 %v2049_v30 }
 0x12c   : > { %2050 = vrsqrt.f32 %v987_v31  ;;  %vm625_vm4 = vmor %vm623_vm3, %vm624_vm2  ;;  %vm994_vm5 = vweird.f32 %v987_v31 }
 0x12d   : > { %v619_v33 = vmul.f32 %v2049_v30, %v618_v32 }
 0x12f   : > { %v620_v34 = vmul.f32 0.5, %v619_v33 }
 0x131   : > { %v621_v35 = vsub.f32 1.5, %v620_v34 }
 0x132   : > { %v2051_v36 = vpop.eup %2050 }
 0x133   : > { %v622_v37 = vmul.f32 %v2049_v30, %v621_v35  ;;  %v989_v38 = vmul.f32 %v2051_v36, %v987_v31  ;;  %vm995_vm6 = vweird.f32 %v2051_v36 }
 0x134   : > { %vm996_vm7 = vmor %vm994_vm5, %vm995_vm6 }
 0x135   : > { %v626_v40 = vsel %vm625_vm4, %v2049_v30, %v622_v37  ;;  %v990_v41 = vmul.f32 %v2051_v36, %v989_v38 }
 0x136   : > { %v627_v42 = vmul.f32 %v626_v40, %v610_v11  ;;  %v2472_v11 = vunpack.c.0.s8 %v722_v7 }
 0x137   : > { %v991_v44 = vmul.f32 0.5, %v990_v41 }
 0x138   : > { %v631_v45 = vmul.f32 %v2034_v39, %v627_v42 }
 0x139   : > { %v992_v46 = vsub.f32 1.5, %v991_v44 }
 0x13a   : > { %v635_v47 = vadd.f32 %v2035_v43, %v631_v45 }
 0x13b   : > { %v993_v48 = vmul.f32 %v2051_v36, %v992_v46 }
 0x13c   : > { %v636_v49 = vpack.c.bf16 %v635_v47, %v635_v47 }
 0x13d   : > { %v997_v50 = vsel %vm996_vm7, %v2051_v36, %v993_v48 }
 0x13e   : > { %1847 = vmatmul.msk.bf16.vlgmr.msra.gmra.mxu0 %vm598_vm0, %v636_v49  ;;  %1856 = vmatmul.msk.bf16.vlgmr.msra.gmra.mxu2 %vm598_vm0, %v636_v49  ;;  %v998_v51 = vmul.f32 %v997_v50, %v981_v16  ;;  %v2232_v16 = vmov 1934713408  }
 0x13f   : > { %v746_v17 = vunpack.c.l.s4 %v2232_v16 }
 0x140   : > { %v1002_v53 = vmul.f32 %v2036_v52, %v998_v51 }
 0x141   : > { %v2480_v24 = vunpack.c.0.s8 %v746_v17 }
 0x142   : > { %v1006_v55 = vadd.f32 %v2037_v54, %v1002_v53 }
 0x144   : > { %v1007_v56 = vpack.c.bf16 %v1006_v55, %v1006_v55 }
 0x14e   : > { %1865 = vmatmul.msk.bf16.vlgmr.msrb.gmra.mxu2 %vm598_vm0, %v1007_v56 }
 0x1bb   : > { %v669_v58 = vpop.f32.mrf.mxu0 }
 0x1bc   : > { %v670_v59 = vadd.f32 %v2038_v57, %v669_v58 }
 0x1be   : > { %713 = vrot.lane.b32.xlu0 %v670_v59, %s2228_s30  ;;  %707 = vrot.lane.b32.xlu2 %v670_v59, %s2229_s26  ;;  %v719_v10 = vrot.slane %v670_v59, 4 }
 0x1c1   : > { %v2458_v60 = vpop.f32.mrf.mxu2 }
 0x1c3   : > { %v671_v61 = vpop.f32.mrf.mxu0 }
 0x1c6   : > { %710 = vrot.lane.b32.xlu2 %v670_v59, %s2230_s28 }
 0x1c9   : > { %v704_v62 = vpop.f32.mrf.mxu2 }
 0x1d1   : > { %v1040_v0 = vpop.f32.mrf.mxu2 }
 0x1d2   : > { %v1041_v1 = vadd.f32 %v2040_v63, %v1040_v0 }
 0x1d4   : > { %v2464_v2 = vmul.f32 0.35355338, %v1041_v1 }
 0x1d6   : > { %1049 = vrot.lane.b32.xlu2 %v2464_v2, %s2230_s28  ;;  %1046 = vrot.lane.b32.xlu1 %v2464_v2, %s2229_s26 }
 0x1d9   : > { %v1042_v3 = vpop.f32.mrf.mxu2 }
 0x1de   : > { %1052 = vrot.lane.b32.xlu2 %v2464_v2, %s2228_s30 }
 0x218   : > { %v708_v4 = vpop.permute.xlu2 %707 }
 0x219   : > { %v731_v14 = vrot.slane %v708_v4, 4 }
 0x220   : > { %v711_v5 = vpop.permute.xlu2 %710 }
 0x221   : > { %v716_v9 = vrot.slane %v711_v5, 4  ;;  %v720_v12 = vsel %vm717_vm8, %v711_v5, %v719_v10  ;;  %v1058_v5 = vrot.slane %v2464_v2, 4 }
 0x222   : > { %v728_v15 = vperm.slane %v720_v12, %v2472_v11 }
 0x223   : > { %v718_v13 = vsel %vm717_vm8, %v716_v9, %v670_v59 }
 0x224   : > { %v724_v18 = vperm.slane %v718_v13, %v2472_v11  ;;  %v755_v23 = vrot.slane %v728_v15, 4 }
 0x226   : > { %v743_v26 = vrot.slane %v724_v18, 4 }
 0x230   : > { %v714_v19 = vpop.permute.xlu0 %713  ;;  %v1050_v41 = vpop.permute.xlu2 %1049 }
 0x231   : > { %v729_v20 = vrot.slane %v714_v19, 4  ;;  %v732_v21 = vsel %vm717_vm8, %v714_v19, %v731_v14  ;;  %v1055_v53 = vrot.slane %v1050_v41, 4 }
 0x232   : > { %v740_v22 = vperm.slane %v732_v21, %v2472_v11 }
 0x233   : > { %v730_v25 = vsel %vm717_vm8, %v729_v20, %v708_v4  ;;  %v1057_v1 = vsel %vm717_vm8, %v1055_v53, %v2464_v2 }
 0x234   : > { %v736_v27 = vperm.slane %v730_v25, %v2472_v11  ;;  %v753_v28 = vrot.slane %v740_v22, 4  ;;  %v756_v29 = vsel %vm717_vm8, %v740_v22, %v755_v23  ;;  %v1063_v16 = vperm.slane %v1057_v1, %v2472_v11 }
 0x235   : > { %v764_v35 = vperm.slane %v756_v29, %v2480_v24 }
 0x236   : > { %v741_v30 = vrot.slane %v736_v27, 4  ;;  %v744_v31 = vsel %vm717_vm8, %v736_v27, %v743_v26  ;;  %v754_v32 = vsel %vm717_vm8, %v753_v28, %v728_v15  ;;  %v1059_v15 = vsel %vm717_vm8, %v1050_v41, %v1058_v5 }
 0x237   : > { %v752_v33 = vperm.slane %v744_v31, %v2480_v24  ;;  %v760_v34 = vperm.slane %v754_v32, %v2480_v24  ;;  %v771_v40 = vrot.slane %v764_v35, 4  ;;  %v1067_v23 = vperm.slane %v1059_v15, %v2472_v11 }
 0x238   : > { %v742_v36 = vsel %vm717_vm8, %v741_v30, %v724_v18  ;;  %v1053_v14 = vpop.permute.xlu2 %1052  ;;  %v1082_v32 = vrot.slane %v1063_v16, 4 }
 0x239   : > { %v748_v37 = vperm.slane %v742_v36, %v2480_v24  ;;  %v767_v38 = vrot.slane %v752_v33, 4  ;;  %v769_v39 = vrot.slane %v760_v34, 4  ;;  %v772_v45 = vsel %vm717_vm8, 0.0, %v771_v40 }
 0x23a   : > { %v784_v48 = vsel %vm717_vm8, %v771_v40, %v760_v34  ;;  %v789_v49 = vrot.slane %v772_v45, 4  ;;  %v1068_v22 = vrot.slane %v1053_v14, 4  ;;  %v1094_v35 = vrot.slane %v1067_v23, 4 }
 0x23b   : > { %v765_v42 = vrot.slane %v748_v37, 4  ;;  %v768_v43 = vsel %vm717_vm8, 0.0, %v767_v38  ;;  %v770_v44 = vsel %vm717_vm8, 0.0, %v769_v39  ;;  %v773_v46 = vsel %vm717_vm8, %v767_v38, %v748_v37 }
 0x23c   : > { %v778_v47 = vrot.slane %v768_v43, 4  ;;  %v777_v51 = vperm.slane %v773_v46, %v2472_v11  ;;  %v788_v52 = vperm.slane %v784_v48, %v2472_v11  ;;  %v790_v55 = vsel %vm717_vm8, %v789_v49, %v770_v44 }
 0x23d   : > { %v766_v50 = vsel %vm717_vm8, 0.0, %v765_v42  ;;  %v794_v57 = vperm.slane %v790_v55, %v2472_v11 }
 0x23e   : > { %v779_v54 = vsel %vm717_vm8, %v778_v47, %v766_v50  ;;  %v797_v58 = vrot.slane %v777_v51, 4  ;;  %v809_v59 = vrot.slane %v788_v52, 4 }
 0x23f   : > { %v783_v56 = vperm.slane %v779_v54, %v2472_v11  ;;  %v807_v63 = vrot.slane %v794_v57, 4 }
 0x240   : > { %v810_v0 = vsel %vm717_vm8, %v794_v57, %v809_v59 }
 0x241   : > { %v795_v61 = vrot.slane %v783_v56, 4  ;;  %v798_v62 = vsel %vm717_vm8, %v783_v56, %v797_v58  ;;  %v818_v4 = vperm.slane %v810_v0, %v2480_v24  ;;  %v808_v7 = vsel %vm717_vm8, %v807_v63, %v788_v52 }
 0x242   : > { %v806_v3 = vperm.slane %v798_v62, %v2480_v24  ;;  %v814_v10 = vperm.slane %v808_v7, %v2480_v24 }
 0x243   : > { %v796_v6 = vsel %vm717_vm8, %v795_v61, %v777_v51  ;;  %v823_v12 = vrot.slane %v818_v4, 4 }
 0x244   : > { %v802_v9 = vperm.slane %v796_v6, %v2480_v24  ;;  %v825_v13 = vrot.slane %v806_v3, 4  ;;  %v819_v17 = vrot.slane %v814_v10, 4 }
 0x245   : > { %v824_v19 = vsel %vm717_vm8, %v823_v12, %v806_v3 }
 0x246   : > { %v821_v18 = vrot.slane %v802_v9, 4  ;;  %v826_v2 = vsel %vm717_vm8, %v818_v4, %v825_v13  ;;  %v829_v20 = vpack.c.bf16 %v824_v19, %v824_v19  ;;  %v820_v25 = vsel %vm717_vm8, %v819_v17, %v802_v9 }
 0x247   : > { %v830_v21 = vpack.c.bf16 %v826_v2, %v826_v2  ;;  %v827_v28 = vpack.c.bf16 %v820_v25, %v820_v25 }
 0x248   : > { %v822_v26 = vsel %vm717_vm8, %v814_v10, %v821_v18  ;;  %v1047_v27 = vpop.permute.xlu1 %1046  ;;  %834 = vst.msk [vmem:[#allocation2 + $0x8] sm:$0xf] %vm831_vm9, %v829_v20 }
 0x249   : > { %v828_v29 = vpack.c.bf16 %v822_v26, %v822_v26  ;;  %835 = vst.msk [vmem:[#allocation2 + $0xc] sm:$0xf] %vm831_vm9, %v830_v21  ;;  %v1069_v30 = vsel %vm717_vm8, %v1068_v22, %v1047_v27  ;;  %v1070_v31 = vrot.slane %v1047_v27, 4 }
 0x24a   : > { %v1075_v33 = vperm.slane %v1069_v30, %v2472_v11  ;;  %832 = vst.msk [vmem:[#allocation2] sm:$0xf] %vm831_vm9, %v827_v28 }
 0x24b   : > { %v1071_v34 = vsel %vm717_vm8, %v1053_v14, %v1070_v31  ;;  %833 = vst.msk [vmem:[#allocation2 + $0x4] sm:$0xf] %vm831_vm9, %v828_v29 }
 0x24c   : > { %v1079_v36 = vperm.slane %v1071_v34, %v2472_v11  ;;  %v1080_v37 = vrot.slane %v1075_v33, 4  ;;  %v1083_v38 = vsel %vm717_vm8, %v1075_v33, %v1082_v32 }
 0x24d   : > { %v1091_v39 = vperm.slane %v1083_v38, %v2480_v24 }
 0x24e   : > { %v1081_v40 = vsel %vm717_vm8, %v1080_v37, %v1063_v16  ;;  %v1092_v41 = vrot.slane %v1079_v36, 4  ;;  %v1095_v42 = vsel %vm717_vm8, %v1079_v36, %v1094_v35 }
 0x24f   : > { %v1087_v43 = vperm.slane %v1081_v40, %v2480_v24  ;;  %v1103_v44 = vperm.slane %v1095_v42, %v2480_v24  ;;  %v1106_v45 = vrot.slane %v1091_v39, 4  ;;  %v1172_v52 = vld [vmem:[#allocation2 + $0x8] sm:$0xf] }
 0x250   : > { %v1093_v46 = vsel %vm717_vm8, %v1092_v41, %v1067_v23  ;;  %v1173_v47 = vld [vmem:[#allocation2 + $0xc] sm:$0xf]  ;;  %v1217_v55 = vsel %vm1174_vm10, %v1172_v52, 0 }
 0x251   : > { %v1099_v48 = vperm.slane %v1093_v46, %v2480_v24  ;;  %v1104_v49 = vrot.slane %v1087_v43, 4  ;;  %v1107_v50 = vsel %vm717_vm8, 0.0, %v1106_v45  ;;  %v1110_v51 = vrot.slane %v1103_v44, 4  ;;  %v1170_v56 = vld [vmem:[#allocation2] sm:$0xf]  ;;  %1226 = vmatpush.bf16.xpose.msra.mxu1 %v1217_v55 }
 0x252   : > { %v1112_v53 = vsel %vm717_vm8, %v1106_v45, %v1087_v43  ;;  %v1117_v54 = vrot.slane %v1107_v50, 4  ;;  %v1236_v57 = vsel %vm1174_vm10, %v1173_v47, 0  ;;  %v1171_v63 = vld [vmem:[#allocation2 + $0x4] sm:$0xf]  ;;  %v1179_v4 = vsel %vm1174_vm10, %v1170_v56, 0 }
 0x253   : > { %v1105_v58 = vsel %vm717_vm8, 0.0, %v1104_v49  ;;  %v1108_v59 = vrot.slane %v1099_v48, 4  ;;  %v1111_v61 = vsel %vm717_vm8, 0.0, %v1110_v51  ;;  %v1116_v62 = vperm.slane %v1112_v53, %v2472_v11  ;;  %1245 = vmatpush.bf16.xpose.msra.mxu2 %v1236_v57  ;;  %1188 = vmatpush.bf16.xpose.msra.mxu3 %v1179_v4  ;;  %v2039_v49 = vld [vmem:[%s2793_s8] ss:$0 sm:$0xff] }
 0x254   : > { %v1118_v0 = vsel %vm717_vm8, %v1117_v54, %v1105_v58  ;;  %v1123_v1 = vsel %vm717_vm8, %v1110_v51, %v1099_v48  ;;  %v1128_v3 = vrot.slane %v1111_v61, 4  ;;  %v1198_v12 = vsel %vm1174_vm10, %v1171_v63, 0 }
 0x255   : > { %v1109_v5 = vsel %vm717_vm8, 0.0, %v1108_v59  ;;  %v1122_v6 = vperm.slane %v1118_v0, %v2472_v11  ;;  %v1127_v7 = vperm.slane %v1123_v1, %v2472_v11  ;;  %v1136_v9 = vrot.slane %v1116_v62, 4  ;;  %1207 = vmatpush.bf16.xpose.msrb.mxu0 %v1198_v12 }
 0x256   : > { %v1129_v10 = vsel %vm717_vm8, %v1128_v3, %v1109_v5  ;;  %v703_v50 = vadd.f32 %v2039_v49, %v2458_v60 }
 0x257   : > { %v1133_v13 = vperm.slane %v1129_v10, %v2472_v11  ;;  %v1134_v14 = vrot.slane %v1122_v6, 4  ;;  %v1148_v15 = vrot.slane %v1127_v7, 4  ;;  %v1137_v16 = vsel %vm717_vm8, %v1122_v6, %v1136_v9 }
 0x258   : > { %v1145_v17 = vperm.slane %v1137_v16, %v2480_v24  ;;  %v848_v6 = vrot.slane %v703_v50, 4 }
 0x259   : > { %v1149_v18 = vsel %vm717_vm8, %v1133_v13, %v1148_v15  ;;  %v1135_v19 = vsel %vm717_vm8, %v1134_v14, %v1116_v62  ;;  %v1146_v2 = vrot.slane %v1133_v13, 4 }
 0x25a   : > { %v1157_v20 = vperm.slane %v1149_v18, %v2480_v24  ;;  %v1164_v21 = vrot.slane %v1145_v17, 4  ;;  %v1141_v22 = vperm.slane %v1135_v19, %v2480_v24 }
 0x25b   : > { %v1147_v23 = vsel %vm717_vm8, %v1146_v2, %v1127_v7 }
 0x25c   : > { %v1165_v25 = vsel %vm717_vm8, %v1157_v20, %v1164_v21  ;;  %v1153_v26 = vperm.slane %v1147_v23, %v2480_v24  ;;  %v1160_v27 = vrot.slane %v1141_v22, 4  ;;  %v1162_v28 = vrot.slane %v1157_v20, 4 }
 0x25d   : > { %v1169_v29 = vpack.c.bf16 %v1165_v25, %v1165_v25 }
 0x25e   : > { %v1161_v30 = vsel %vm717_vm8, %v1153_v26, %v1160_v27  ;;  %v1163_v31 = vsel %vm717_vm8, %v1162_v28, %v1145_v17  ;;  %v1158_v32 = vrot.slane %v1153_v26, 4 }
 0x25f   : > { %1869 = vmatmul.msk.bf16.vlgmr.msra.gmra.mxu2 %vm1174_vm10, %v1169_v29  ;;  %v1167_v33 = vpack.c.bf16 %v1161_v30, %v1161_v30  ;;  %v1168_v34 = vpack.c.bf16 %v1163_v31, %v1163_v31 }
 0x260   : > { %v1159_v35 = vsel %vm717_vm8, %v1158_v32, %v1141_v22 }
 0x261   : > { %1867 = vmatmul.msk.bf16.vlgmr.msrb.gmra.mxu0 %vm1174_vm10, %v1167_v33  ;;  %1868 = vmatmul.msk.bf16.vlgmr.msra.gmra.mxu1 %vm1174_vm10, %v1168_v34  ;;  %v1166_v36 = vpack.c.bf16 %v1159_v35, %v1159_v35 }
 0x263   : > { %1866 = vmatmul.msk.bf16.vlgmr.msra.gmra.mxu3 %vm1174_vm10, %v1166_v36 }
 0x2de   : > { %v1209_v37 = vpop.f32.mrf.mxu0  ;;  %v1228_v38 = vpop.f32.mrf.mxu1 }
 0x2df   : > { %v1257_v39 = vsel %vm1174_vm10, %v1228_v38, -inf  ;;  %v1254_v40 = vsel %vm1174_vm10, %v1209_v37, -inf }
 0x2e0   : > { %1258 = vmax.xlane.f32.xlu1 %v1257_v39  ;;  %1255 = vmax.xlane.f32.xlu2 %v1254_v40 }
 0x2e2   : > { %v1247_v41 = vpop.f32.mrf.mxu2 }
 0x2e3   : > { %v1260_v42 = vsel %vm1174_vm10, %v1247_v41, -inf }
 0x2e4   : > { %1261 = vmax.xlane.f32.xlu0 %v1260_v42 }
 0x2e6   : > { %v1190_v43 = vpop.f32.mrf.mxu3  ;;  %v1211_v44 = vpop.f32.mrf.mxu0 }
 0x2e7   : > { %v1230_v45 = vpop.f32.mrf.mxu1  ;;  %v1251_v46 = vsel %vm1174_vm10, %v1190_v43, -inf }
 0x2e8   : > { %1252 = vmax.xlane.f32.xlu2 %v1251_v46 }
 0x2ea   : > { %v1249_v47 = vpop.f32.mrf.mxu2 }
 0x2ee   : > { %v1192_v48 = vpop.f32.mrf.mxu3 }
 0x2f8   : > { %837 = vrot.lane.b32.xlu0 %v703_v50, %s2229_s26 }
 0x2f9   : > { %843 = vrot.lane.b32.xlu1 %v703_v50, %s2228_s30  ;;  %s583_s30 = sand.u32 1, %s2205_s25  }
 0x2fa   : > { %s1837_s26 = sshll.u32 %s583_s30, 3 }
 0x300   : > { %840 = vrot.lane.b32.xlu2 %v703_v50, %s2230_s28  ;;  %s1926_s28 = sshll.u32 %s2213_s27, 3  ;;  %s1720_s27 = scalar_lea.sflag [#allocation6], %s583_s30 }
 0x353   : > { %v1259_v51 = vpop.xlane.xlu1 %1258  ;;  %v1256_v52 = vpop.xlane.xlu2 %1255 }
 0x354   : > { %v1265_v53 = vsub.f32 %v1228_v38, %v1259_v51  ;;  %v1264_v60 = vsub.f32 %v1209_v37, %v1256_v52 }
 0x356   : > { %v1271_v54 = vmul.f32 1.442695, %v1265_v53  ;;  %v1269_v1 = vmul.f32 1.442695, %v1264_v60 }
 0x357   : > { %v1262_v55 = vpop.xlane.xlu0 %1261 }
 0x358   : > { %2052 = vpow2.f32 %v1271_v54  ;;  %v1266_v56 = vsub.f32 %v1247_v41, %v1262_v55 }
 0x35a   : > { %v1273_v57 = vmul.f32 1.442695, %v1266_v56 }
 0x35b   : > { %v1253_v58 = vpop.xlane.xlu2 %1252 }
 0x35c   : > { %2054 = vpow2.f32 %v1273_v57  ;;  %v1263_v59 = vsub.f32 %v1190_v43, %v1253_v58 }
 0x35e   : > { %v2581_v61 = vpop.eup %2052  ;;  %v1267_v62 = vmul.f32 1.442695, %v1263_v59 }
 0x35f   : > { %v1281_v63 = vsel %vm1174_vm10, %v2581_v61, 0.0 }
 0x360   : > { %2056 = vpow2.f32 %v1267_v62  ;;  %1282 = vadd.xlane.f32.xlu1 %v1281_v63 }
 0x361   : > { %2058 = vpow2.f32 %v1269_v1 }
 0x362   : > { %v2585_v0 = vpop.eup %2054 }
 0x363   : > { %v841_v3 = vpop.permute.xlu2 %840  ;;  %v1284_v4 = vsel %vm1174_vm10, %v2585_v0, 0.0 }
 0x364   : > { %v846_v5 = vrot.slane %v841_v3, 4  ;;  %1285 = vadd.xlane.f32.xlu2 %v1284_v4  ;;  %v849_v9 = vsel %vm717_vm8, %v841_v3, %v848_v6 }
 0x365   : > { %v857_v13 = vperm.slane %v849_v9, %v2472_v11 }
 0x366   : > { %v2589_v7 = vpop.eup %2056  ;;  %v847_v12 = vsel %vm717_vm8, %v846_v5, %v703_v50 }
 0x367   : > { %v1275_v10 = vsel %vm1174_vm10, %v2589_v7, 0.0  ;;  %v853_v15 = vperm.slane %v847_v12, %v2472_v11  ;;  %v2597_v18 = vpop.eup %2058  ;;  %v884_v20 = vrot.slane %v857_v13, 4 }
 0x368   : > { %1276 = vadd.xlane.f32.xlu0 %v1275_v10  ;;  %v1278_v26 = vsel %vm1174_vm10, %v2597_v18, 0.0 }
 0x369   : > { %v872_v23 = vrot.slane %v853_v15, 4 }
 0x36a   : > { %v838_v14 = vpop.permute.xlu0 %837 }
 0x36b   : > { %v860_v16 = vrot.slane %v838_v14, 4  ;;  %v844_v17 = vpop.permute.xlu1 %843 }
 0x36c   : > { %v858_v19 = vrot.slane %v844_v17, 4 }
 0x36d   : > { %v861_v2 = vsel %vm717_vm8, %v844_v17, %v860_v16 }
 0x36e   : > { %v859_v21 = vsel %vm717_vm8, %v858_v19, %v838_v14  ;;  %v869_v22 = vperm.slane %v861_v2, %v2472_v11 }
 0x36f   : > { %v865_v25 = vperm.slane %v859_v21, %v2472_v11 }
 0x370   : > { %v882_v27 = vrot.slane %v869_v22, 4  ;;  %v885_v28 = vsel %vm717_vm8, %v869_v22, %v884_v20  ;;  %1279 = vadd.xlane.f32.xlu0 %v1278_v26 }
 0x371   : > { %v870_v29 = vrot.slane %v865_v25, 4  ;;  %v873_v30 = vsel %vm717_vm8, %v865_v25, %v872_v23  ;;  %v893_v31 = vperm.slane %v885_v28, %v2480_v24 }
 0x372   : > { %v881_v32 = vperm.slane %v873_v30, %v2480_v24  ;;  %v883_v33 = vsel %vm717_vm8, %v882_v27, %v857_v13 }
 0x373   : > { %v871_v34 = vsel %vm717_vm8, %v870_v29, %v853_v15  ;;  %v889_v35 = vperm.slane %v883_v33, %v2480_v24  ;;  %v900_v36 = vrot.slane %v893_v31, 4 }
 0x374   : > { %v877_v37 = vperm.slane %v871_v34, %v2480_v24  ;;  %v896_v38 = vrot.slane %v881_v32, 4 }
 0x375   : > { %v898_v39 = vrot.slane %v889_v35, 4  ;;  %v901_v40 = vsel %vm717_vm8, 0.0, %v900_v36  ;;  %v913_v41 = vsel %vm717_vm8, %v900_v36, %v889_v35 }
 0x376   : > { %v894_v42 = vrot.slane %v877_v37, 4  ;;  %v897_v43 = vsel %vm717_vm8, 0.0, %v896_v38  ;;  %v902_v44 = vsel %vm717_vm8, %v896_v38, %v877_v37  ;;  %v917_v45 = vperm.slane %v913_v41, %v2472_v11 }
 0x377   : > { %v899_v46 = vsel %vm717_vm8, 0.0, %v898_v39  ;;  %v906_v47 = vperm.slane %v902_v44, %v2472_v11  ;;  %v907_v48 = vrot.slane %v897_v43, 4  ;;  %v918_v49 = vrot.slane %v901_v40, 4 }
 0x378   : > { %v895_v50 = vsel %vm717_vm8, 0.0, %v894_v42  ;;  %v938_v51 = vrot.slane %v917_v45, 4 }
 0x379   : > { %v908_v52 = vsel %vm717_vm8, %v907_v48, %v895_v50  ;;  %v919_v53 = vsel %vm717_vm8, %v918_v49, %v899_v46  ;;  %v926_v54 = vrot.slane %v906_v47, 4 }
 0x37a   : > { %v912_v55 = vperm.slane %v908_v52, %v2472_v11  ;;  %v923_v56 = vperm.slane %v919_v53, %v2472_v11 }
 0x37c   : > { %v924_v57 = vrot.slane %v912_v55, 4  ;;  %v927_v58 = vsel %vm717_vm8, %v912_v55, %v926_v54  ;;  %v936_v59 = vrot.slane %v923_v56, 4  ;;  %v939_v60 = vsel %vm717_vm8, %v923_v56, %v938_v51 }
 0x37d   : > { %v935_v62 = vperm.slane %v927_v58, %v2480_v24  ;;  %v947_v63 = vperm.slane %v939_v60, %v2480_v24 }
 0x37e   : > { %v925_v1 = vsel %vm717_vm8, %v924_v57, %v906_v47  ;;  %v937_v3 = vsel %vm717_vm8, %v936_v59, %v917_v45 }
 0x37f   : > { %v931_v4 = vperm.slane %v925_v1, %v2480_v24  ;;  %v943_v5 = vperm.slane %v937_v3, %v2480_v24  ;;  %v952_v6 = vrot.slane %v947_v63, 4  ;;  %v954_v9 = vrot.slane %v935_v62, 4 }
 0x381   : > { %v948_v10 = vrot.slane %v943_v5, 4  ;;  %v950_v12 = vrot.slane %v931_v4, 4  ;;  %v953_v13 = vsel %vm717_vm8, %v952_v6, %v935_v62  ;;  %v955_v14 = vsel %vm717_vm8, %v947_v63, %v954_v9 }
 0x382   : > { %v958_v15 = vpack.c.bf16 %v953_v13, %v953_v13  ;;  %v959_v16 = vpack.c.bf16 %v955_v14, %v955_v14 }
 0x383   : > { %v949_v17 = vsel %vm717_vm8, %v948_v10, %v931_v4  ;;  %v951_v19 = vsel %vm717_vm8, %v943_v5, %v950_v12 }
 0x384   : > { %v956_v2 = vpack.c.bf16 %v949_v17, %v949_v17  ;;  %v957_v20 = vpack.c.bf16 %v951_v19, %v951_v19  ;;  %962 = vst.msk [vmem:[#allocation3 + $0x8] sm:$0xf] %vm831_vm9, %v958_v15 }
 0x385   : > { %963 = vst.msk [vmem:[#allocation3 + $0xc] sm:$0xf] %vm831_vm9, %v959_v16 }
 0x386   : > { %960 = vst.msk [vmem:[#allocation3] sm:$0xf] %vm831_vm9, %v956_v2 }
 0x387   : > { %961 = vst.msk [vmem:[#allocation3 + $0x4] sm:$0xf] %vm831_vm9, %v957_v20 }
 0x38b   : > { %v1301_v21 = vld [vmem:[#allocation3 + $0x8] sm:$0xf] }
 0x38c   : > { %v1346_v22 = vsel %vm1306_vm11, %v1301_v21, 0  ;;  %v1302_v23 = vld [vmem:[#allocation3 + $0xc] sm:$0xf] }
 0x38d   : > { %1355 = vmatpush.bf16.msrb.mxu1 %v1346_v22  ;;  %v1365_v25 = vsel %vm1306_vm11, %v1302_v23, 0  ;;  %v1299_v26 = vld [vmem:[#allocation3] sm:$0xf] }
 0x38e   : > { %1374 = vmatpush.bf16.msrb.mxu2 %v1365_v25  ;;  %v1308_v27 = vsel %vm1306_vm11, %v1299_v26, 0  ;;  %v1300_v28 = vld [vmem:[#allocation3 + $0x4] sm:$0xf] }
 0x38f   : > { %1317 = vmatpush.bf16.msrb.mxu3 %v1308_v27  ;;  %v1327_v29 = vsel %vm1306_vm11, %v1300_v28, 0 }
 0x390   : > { %1336 = vmatpush.bf16.msra.mxu0 %v1327_v29 }
 0x3d3   : > { %v1283_v30 = vpop.xlane.xlu1 %1282 }
 0x3d4   : > { %2060 = vrcp.f32 %v1283_v30 }
 0x3d7   : > { %v1286_v31 = vpop.xlane.xlu2 %1285 }
 0x3d8   : > { %2062 = vrcp.f32 %v1286_v31 }
 0x3da   : > { %v2061_v32 = vpop.eup %2060 }
 0x3db   : > { %v1293_v33 = vmul.f32 %v2061_v32, %v2581_v61  ;;  %v1277_v34 = vpop.xlane.xlu0 %1276 }
 0x3dc   : > { %2064 = vrcp.f32 %v1277_v34 }
 0x3dd   : > { %v1297_v35 = vpack.c.bf16 %v1293_v33, %v1293_v33 }
 0x3de   : > { %v2063_v36 = vpop.eup %2062 }
 0x3df   : > { %v1294_v37 = vmul.f32 %v2063_v36, %v2585_v0  ;;  %1872 = vmatmul.msk.bf16.vlgmr.msrb.gmra.mxu1 %vm1174_vm10, %v1297_v35 }
 0x3e1   : > { %v1298_v38 = vpack.c.bf16 %v1294_v37, %v1294_v37 }
 0x3e2   : > { %v2065_v39 = vpop.eup %2064 }
 0x3e3   : > { %v1291_v40 = vmul.f32 %v2065_v39, %v2589_v7  ;;  %v1280_v41 = vpop.xlane.xlu0 %1279  ;;  %1873 = vmatmul.msk.bf16.vlgmr.msrb.gmra.mxu2 %vm1174_vm10, %v1298_v38 }
 0x3e4   : > { %2066 = vrcp.f32 %v1280_v41 }
 0x3e5   : > { %v1295_v42 = vpack.c.bf16 %v1291_v40, %v1291_v40 }
 0x3e7   : > { %1870 = vmatmul.msk.bf16.vlgmr.msrb.gmra.mxu3 %vm1174_vm10, %v1295_v42 }
 0x3ea   : > { %v2067_v61 = vpop.eup %2066 }
 0x3eb   : > { %v1292_v43 = vmul.f32 %v2067_v61, %v2597_v18 }
 0x3ed   : > { %v1296_v44 = vpack.c.bf16 %v1292_v43, %v1292_v43 }
 0x3ef   : > { %1871 = vmatmul.msk.bf16.vlgmr.msra.gmra.mxu0 %vm1174_vm10, %v1296_v44 }
 0x45c   : > { %v1357_v0 = vpop.f32.mrf.mxu1 }
 0x45d   : > { %v1380_v47 = vrot.slane %v1357_v0, 4 }
 0x464   : > { %v1359_v45 = vpop.f32.mrf.mxu1 }
 0x466   : > { %v1376_v46 = vpop.f32.mrf.mxu2 }
 0x467   : > { %v1392_v49 = vrot.slane %v1376_v46, 4 }
 0x46a   : > { %v1319_v48 = vpop.f32.mrf.mxu3 }
 0x46b   : > { %v1381_v7 = vsel %vm717_vm8, %v1380_v47, %v1319_v48  ;;  %v1382_v50 = vrot.slane %v1319_v48, 4 }
 0x46c   : > { %v1387_v51 = vperm.slane %v1381_v7, %v2472_v11  ;;  %v1338_v52 = vpop.f32.mrf.mxu0 }
 0x46d   : > { %v1383_v53 = vsel %vm717_vm8, %v1357_v0, %v1382_v50  ;;  %v1393_v54 = vsel %vm717_vm8, %v1392_v49, %v1338_v52  ;;  %v1394_v18 = vrot.slane %v1338_v52, 4 }
 0x46e   : > { %v1391_v55 = vperm.slane %v1383_v53, %v2472_v11  ;;  %v1406_v56 = vrot.slane %v1387_v51, 4  ;;  %v1399_v57 = vperm.slane %v1393_v54, %v2472_v11  ;;  %v1378_v58 = vpop.f32.mrf.mxu2 }
 0x46f   : > { %v1395_v59 = vsel %vm717_vm8, %v1376_v46, %v1394_v18  ;;  %v2041_v58 = vld [vmem:[%s2795_s10] ss:$0 sm:$0xff] }
 0x470   : > { %v1418_v60 = vrot.slane %v1391_v55, 4  ;;  %v1403_v62 = vperm.slane %v1395_v59, %v2472_v11  ;;  %v1404_v63 = vrot.slane %v1399_v57, 4  ;;  %v1407_v1 = vsel %vm717_vm8, %v1399_v57, %v1406_v56 }
 0x471   : > { %v1415_v3 = vperm.slane %v1407_v1, %v2480_v24 }
 0x472   : > { %v1405_v4 = vsel %vm717_vm8, %v1404_v63, %v1387_v51  ;;  %v1416_v5 = vrot.slane %v1403_v62, 4  ;;  %v1419_v6 = vsel %vm717_vm8, %v1403_v62, %v1418_v60  ;;  %v1321_v9 = vpop.f32.mrf.mxu3  ;;  %v1936_v51 = vld [vmem:[%s2794_s9 + $0x8] sm:$0xff]  ;;  %v2074_v62 = vld [vmem:[%s2414_s22] sm:$0xff] }
 0x473   : > { %v1411_v10 = vperm.slane %v1405_v4, %v2480_v24  ;;  %v1427_v12 = vperm.slane %v1419_v6, %v2480_v24  ;;  %v1430_v13 = vrot.slane %v1415_v3, 4  ;;  %1537 = vmatpush.bf16.msra.mxu3 %v1936_v51 }
 0x474   : > { %v1417_v14 = vsel %vm717_vm8, %v1416_v5, %v1391_v55  ;;  %v1340_v15 = vpop.f32.mrf.mxu0 }
 0x475   : > { %v1423_v16 = vperm.slane %v1417_v14, %v2480_v24  ;;  %v1428_v17 = vrot.slane %v1411_v10, 4  ;;  %v1431_v19 = vsel %vm717_vm8, 0.0, %v1430_v13  ;;  %v1434_v2 = vrot.slane %v1427_v12, 4  ;;  %v1938_v12 = vld [vmem:[#allocation7 + $0x8] sm:$0xff] }
 0x476   : > { %v1436_v20 = vsel %vm717_vm8, %v1430_v13, %v1411_v10  ;;  %v1441_v21 = vrot.slane %v1431_v19, 4  ;;  %1607 = vmatpush.bf16.msrb.mxu0 %v1938_v12  ;;  %v1937_v13 = vld [vmem:[#allocation7] sm:$0xff] }
 0x477   : > { %v1429_v22 = vsel %vm717_vm8, 0.0, %v1428_v17  ;;  %v1432_v23 = vrot.slane %v1423_v16, 4  ;;  %v1435_v25 = vsel %vm717_vm8, 0.0, %v1434_v2  ;;  %v1440_v26 = vperm.slane %v1436_v20, %v2472_v11 }
 0x478   : > { %v1452_v27 = vrot.slane %v1435_v25, 4  ;;  %v1442_v28 = vsel %vm717_vm8, %v1441_v21, %v1429_v22  ;;  %v1447_v29 = vsel %vm717_vm8, %v1434_v2, %v1423_v16 }
 0x479   : > { %v1433_v30 = vsel %vm717_vm8, 0.0, %v1432_v23  ;;  %v1446_v31 = vperm.slane %v1442_v28, %v2472_v11  ;;  %v1451_v32 = vperm.slane %v1447_v29, %v2472_v11  ;;  %v1460_v33 = vrot.slane %v1440_v26, 4  ;;  %v2042_v23 = vld [vmem:[%s2796_s11] ss:$0 sm:$0xff] }
 0x47a   : > { %v1453_v34 = vsel %vm717_vm8, %v1452_v27, %v1433_v30  ;;  %1608 = vmatpush.bf16.msrb.mxu0 %v1937_v13  ;;  %v1946_v30 = vld [vmem:[%s2800_s15 + $0x38] sm:$0xff] }
 0x47b   : > { %v1457_v35 = vperm.slane %v1453_v34, %v2472_v11  ;;  %v1461_v36 = vsel %vm717_vm8, %v1446_v31, %v1460_v33  ;;  %v1472_v37 = vrot.slane %v1451_v32, 4  ;;  %v1458_v38 = vrot.slane %v1446_v31, 4  ;;  %1704 = vmatpush.bf16.msra.mxu1 %v1946_v30  ;;  %v1945_v31 = vld [vmem:[%s2800_s15 + $0x30] sm:$0xff]  ;;  %v1943_v33 = vld [vmem:[%s2800_s15 + $0x20] sm:$0xff]  ;;  %v1942_v34 = vld [vmem:[%s2800_s15 + $0x18] sm:$0xff] }
 0x47c   : > { %v1469_v39 = vperm.slane %v1461_v36, %v2480_v24  ;;  %v2044_v36 = vld [vmem:[%s2799_s14] ss:$0 sm:$0xff] }
 0x47d   : > { %v1473_v40 = vsel %vm717_vm8, %v1457_v35, %v1472_v37  ;;  %v1459_v41 = vsel %vm717_vm8, %v1458_v38, %v1440_v26  ;;  %v1470_v42 = vrot.slane %v1457_v35, 4  ;;  %v1941_v35 = vld [vmem:[%s2800_s15 + $0x10] sm:$0xff]  ;;  %v1940_v37 = vld [vmem:[%s2800_s15 + $0x8] sm:$0xff] }
 0x47e   : > { %v1481_v61 = vperm.slane %v1473_v40, %v2480_v24  ;;  %v1488_v43 = vrot.slane %v1469_v39, 4  ;;  %v1465_v44 = vperm.slane %v1459_v41, %v2480_v24  ;;  %v1939_v41 = vld [vmem:[%s2800_s15] sm:$0xff] }
 0x47f   : > { %v1471_v0 = vsel %vm717_vm8, %v1470_v42, %v1451_v32  ;;  %1705 = vmatpush.bf16.msra.mxu1 %v1945_v31  ;;  %v1944_v32 = vld [vmem:[%s2800_s15 + $0x28] sm:$0xff] }
 0x480   : > { %v1489_v11 = vsel %vm717_vm8, %v1481_v61, %v1488_v43  ;;  %v1486_v45 = vrot.slane %v1481_v61, 4  ;;  %v1477_v46 = vperm.slane %v1471_v0, %v2480_v24  ;;  %v1484_v47 = vrot.slane %v1465_v44, 4  ;;  %v1935_v24 = vld [vmem:[%s2794_s9] sm:$0xff] }
 0x481   : > { %1499 = vrot.lane.b32.xlu1 %v1489_v11, %s2233_s23  ;;  %1538 = vmatpush.bf16.msra.mxu3 %v1935_v24  ;;  %s1731_s23 = scalar_lea.hbm %s2802_s17, %s1926_s28 }
 0x482   : > { %v1487_v48 = vsel %vm717_vm8, %v1486_v45, %v1469_v39  ;;  %v1482_v49 = vrot.slane %v1477_v46, 4  ;;  %v1485_v7 = vsel %vm717_vm8, %v1477_v46, %v1484_v47  ;;  %s1735_s0 = sshll.u32 %s1731_s23, 4  ;;  %s1736_s0 = int_to_ptr.hbm [resolvable:$true] %s1735_s0 }
 0x483   : > { %1495 = vrot.lane.b32.xlu0 %v1487_v48, %s2234_s20  ;;  %1491 = vrot.lane.b32.xlu2 %v1485_v7, %s2235_s19  ;;  %s585_s20 = scalar_lea.vmem [#allocation9], %s1837_s26  ;;  %s2149_s18 = sshra.s32 %s1736_s0, 4  ;;  %s2150_s18 = int_to_ptr.hbm [resolvable:$true] %s2149_s18 }
 0x484   : > { %v1483_v50 = vsel %vm717_vm8, %v1482_v49, %v1465_v44  ;;  %1706 = vmatpush.bf16.msra.mxu1 %v1944_v32  ;;  %s1733_s19 = sshll.u32 %s585_s20, 4  ;;  %s2151_s29 = scalar_lea.hbm %s2150_s18, 8  ;;  %s1734_s19 = int_to_ptr.vmem [resolvable:$true] %s1733_s19 }
 0x485   : > { %p2152_p1 = scmp.ne.s32.totalorder %s2150_s18, %s2151_s29  ;;  %s2155_s26 = scalar_lea.hbm %s2802_s17, 16 }
 0x486   : > { %p2156_p5 = scmp.lt.s32.totalorder %s2150_s18, %s2802_s17  ;;  %p2157_p6 = scmp.lt.s32.totalorder %s2155_s26, %s2151_s29 }
 0x487   : > { %p2153_p2 = pnand %p2152_p1, %p2366_p4 }
 0x488   : > { %1707 = vmatpush.bf16.msra.mxu1 %v1943_v33  ;;  %p2158_p7 = por %p2157_p6, %p2156_p5 }
 0x489   : > { %p2154_p3 = pneg %p2153_p2 }
 0x48b   : > { %p2159_p9 = pnand %p2158_p7, %p2154_p3 }
 0x48c   : > { %1708 = vmatpush.bf16.msra.mxu1 %v1942_v34 }
 0x490   : > { %1709 = vmatpush.bf16.msra.mxu1 %v1941_v35 }
 0x494   : > { %1710 = vmatpush.bf16.msra.mxu1 %v1940_v37 }
 0x498   : > { %1711 = vmatpush.bf16.msra.mxu1 %v1939_v41 }
 0x4dd   : > { %v1492_v52 = vpop.permute.xlu2 %1491 }
 0x4de   : > { %v1502_v53 = vsel %vm1174_vm10, %v1483_v50, %v1492_v52 }
 0x4f3   : > { %v1500_v18 = vpop.permute.xlu1 %1499 }
 0x4f5   : > { %v1496_v54 = vpop.permute.xlu0 %1495 }
 0x4f6   : > { %v1504_v55 = vsel %vm1503_vm12, %v1502_v53, %v1496_v54  ;;  %v2045_v53 = vld [vmem:[%s2801_s16] ss:$0 sm:$0xff] }
 0x4f7   : > { %v1506_v56 = vsel %vm1505_vm13, %v1504_v55, %v1500_v18 }
 0x4f8   : > { %v1507_v57 = vpack.c.bf16 %v1506_v56, %v1506_v56 }
 0x4fa   : > { %1882 = vmatmul.msk.bf16.vlgmr.msra.gmra.mxu3 %vm598_vm0, %v1507_v57 }
 0x57d   : > { %v1540_v59 = vpop.f32.mrf.mxu3 }
 0x57e   : > { %v1541_v60 = vadd.f32 %v2041_v58, %v1540_v59 }
 0x580   : > { %v2701_v63 = vadd.f32 %v2074_v62, %v1541_v60 }
 0x582   : > { %v1547_v1 = vsel %vm598_vm0, %v2701_v63, 0.0 }
 0x583   : > { %1548 = vadd.xlane.f32.xlu0 %v1547_v1 }
 0x585   : > { %v1542_v3 = vpop.f32.mrf.mxu3 }
 0x5f6   : > { %v1549_v4 = vpop.xlane.xlu0 %1548 }
 0x5f7   : > { %v1550_v5 = vmul.f32 %v1549_v4, %v2418_v8 }
 0x5f9   : > { %v1551_v6 = vsub.f32 %v2701_v63, %v1550_v5 }
 0x5fb   : > { %v1552_v9 = vmul.f32 %v1551_v6, %v1551_v6 }
 0x5fd   : > { %v1553_v10 = vsel %vm598_vm0, %v1552_v9, 0.0 }
 0x5fe   : > { %1554 = vadd.xlane.f32.xlu2 %v1553_v10 }
 0x671   : > { %v1555_v14 = vpop.xlane.xlu2 %1554 }
 0x672   : > { %v1556_v15 = vmul.f32 %v1555_v14, %v2418_v8  ;;  %v2043_v8 = vld [vmem:[%s2797_s12] ss:$0 sm:$0xff] }
 0x674   : > { %v1557_v16 = vadd.f32 1e-05, %v1556_v15 }
 0x676   : > { %2068 = vrsqrt.f32 %v1557_v16  ;;  %vm1564_vm15 = vweird.f32 %v1557_v16 }
 0x67c   : > { %v2069_v17 = vpop.eup %2068 }
 0x67d   : > { %v1559_v19 = vmul.f32 %v2069_v17, %v1557_v16  ;;  %vm1565_vm14 = vweird.f32 %v2069_v17 }
 0x67e   : > { %vm1566_vm1 = vmor %vm1564_vm15, %vm1565_vm14 }
 0x67f   : > { %v1560_v2 = vmul.f32 %v2069_v17, %v1559_v19 }
 0x681   : > { %v1561_v20 = vmul.f32 0.5, %v1560_v2 }
 0x683   : > { %v1562_v21 = vsub.f32 1.5, %v1561_v20 }
 0x685   : > { %v1563_v22 = vmul.f32 %v2069_v17, %v1562_v21 }
 0x687   : > { %v1567_v25 = vsel %vm1566_vm1, %v2069_v17, %v1563_v22 }
 0x688   : > { %v1568_v26 = vmul.f32 %v1567_v25, %v1551_v6 }
 0x68a   : > { %v1572_v27 = vmul.f32 %v2042_v23, %v1568_v26 }
 0x68c   : > { %v1576_v28 = vadd.f32 %v2043_v8, %v1572_v27 }
 0x68e   : > { %v1577_v29 = vpack.c.bf16 %v1576_v28, %v1576_v28 }
 0x690   : > { %1891 = vmatmul.msk.bf16.vlgmr.msrb.gmra.mxu0 %vm598_vm0, %v1577_v29 }
 0x70d   : > { %v1610_v38 = vpop.f32.mrf.mxu0 }
 0x70e   : > { %v1611_v39 = vadd.f32 %v2044_v36, %v1610_v38 }
 0x710   : > { %v1892_v40 = vmul.f32 -1.702, %v1611_v39 }
 0x712   : > { %v1616_v42 = vmul.f32 1.442695, %v1892_v40 }
 0x714   : > { %2070 = vpow2.f32 %v1616_v42 }
 0x715   : > { %v1612_v61 = vpop.f32.mrf.mxu0 }
 0x71a   : > { %v2071_v43 = vpop.eup %2070 }
 0x71b   : > { %v1618_v44 = vadd.f32 1.0, %v2071_v43 }
 0x71d   : > { %2072 = vrcp.f32 %v1618_v44  ;;  %v1630_v46 = vand.u32 2147483648, %v1618_v44  ;;  %v1628_v48 = vand.u32 2147483647, %v1618_v44  ;;  %vm1624_vm3 = vweird.f32 %v1618_v44 }
 0x71f   : > { %v1631_v7 = vor.u32 1.1754944e-38, %v1630_v46  ;;  %vm1629_vm5 = vcmp.eq.f32.partialorder %v1628_v48, 8.507059e+37 }
 0x723   : > { %v2073_v0 = vpop.eup %2072 }
 0x724   : > { %v1620_v11 = vmul.f32 %v2073_v0, %v1618_v44  ;;  %vm1625_vm2 = vweird.f32 %v2073_v0 }
 0x725   : > { %vm1626_vm4 = vmor %vm1624_vm3, %vm1625_vm2 }
 0x726   : > { %v1621_v45 = vsub.f32 1.0, %v1620_v11 }
 0x728   : > { %v1622_v47 = vmul.f32 %v2073_v0, %v1621_v45 }
 0x72a   : > { %v1623_v49 = vadd.f32 %v2073_v0, %v1622_v47 }
 0x72c   : > { %v1627_v50 = vsel %vm1626_vm4, %v2073_v0, %v1623_v49 }
 0x72d   : > { %v1632_v51 = vsel %vm1629_vm5, %v1631_v7, %v1627_v50 }
 0x72e   : > { %v1634_v24 = vmul.f32 %v1632_v51, %v1611_v39 }
 0x730   : > { %v1635_v52 = vpack.c.bf16 %v1634_v24, %v1634_v24 }
 0x732   : > { %1712 = vmatmul.bf16.vlgmr.msra.gmra.mxu1 %v1635_v52 }
 0x7af   : > { %v1713_v54 = vpop.f32.mrf.mxu1 }
 0x7b0   : > { %v1714_v18 = vadd.f32 %v2045_v53, %v1713_v54 }
 0x7b2   : > { %v1717_v55 = vadd.f32 %v1714_v18, %v2701_v63 }
 0x7b4   : > { %1718 = vst.msk [vmem:[%s585_s20] sm:$0xff] %vm598_vm0, %v1717_v55 }
 0x7b5   : > { %2162 = shalt.err (!%p2159_p9)
}
 0x7b6   : > { %1955 = dma.vmem_to_hbm [thread:$0]  (%p2366_p4), %s1734_s19, 128, %s1736_s0, %s1720_s27  }
 0x7b7   : > { %v1715_v56 = vpop.f32.mrf.mxu1 }
 0x7b8 PF: > { %s2831_s30 = sld [smem:[#allocation16_spill]] }
 0x7b9   : > { %s2832_s23 = sld [smem:[#allocation13_spill]] }
 0x7be   : > { %p1972_p10 = scmp.ge.s32.totalorder %s2831_s30, 2 }
 0x7bf   : > { %s1747_s2 = sand.u32 1, %s2832_s23  }
 0x7c0   : > { %p1965_p11 = pnand %p1972_p10, %p2373_p8  ;;  %s1748_s28 = scalar_lea.sflag [#allocation6], %s1747_s2 }
 0x7c2   : > { %p1966_p12 = pneg %p1965_p11 }
 0x7c4   : > { %2196 = dma.done.wait (%p1966_p12), %s1748_s28, 128  }
 0x7c5   : > { %2198 = vsyncadd (%p1966_p12), %s1748_s28, 4294967168  ;;  %s32_s29 = sadd.s32 1, %s2831_s30   ;;  %s2834_s18 = sld [smem:[#allocation14_spill]] }
 0x7c6   : > { %p29_p13 = scmp.ge.s32.totalorder %s32_s29, 4   ;;  %s2835_s26 = sld [smem:[#allocation20_spill]] }
 0x7c7   : > { %s2836_s27 = sld [smem:[#allocation15_spill]]  ;;  %s2838_s24 = smov %s2205_s25 }
 0x7c8   : > { %s2837_s28 = sld [smem:[#allocation17_spill]]  ;;  %31 = sbr.rel (!%p29_p13) target bundleno = 10 (0xa), region = 137 }
 0x7cb   : > { %s2839_s25 = smov %s2834_s18 }
 0x7cd   :  { %1754 = vsyncpa [#allocation5], 1 }
 0x7ce   :  { %1756 = vsyncpa [#allocation5 + $0x1], 1 }
 0x7cf   :  { %1757 = vsyncpa [#allocation8], 1 }
 0x7d0   :  { %1758 = vsyncpa [#allocation6], 1 }
 0x7d1   :  { %1760 = vsyncpa [#allocation6 + $0x1], 1 }

</bundles_post_ra>
